<compile_context>
chip_gen: v7x
topology: tpu7x:2x2x1
jax: 0.10.0
libtpu: 0.0.40
codegen_flags: <defaults>
</compile_context>

<pallas_src>
import jax
import jax.numpy as jnp
from jax import lax
from jax.experimental import pallas as pl
from jax.experimental.pallas import tpu as pltpu

EPS = 1e-5


# ----------------------------------------------------------------------------
# Small utilities
# ----------------------------------------------------------------------------
def _nbytes(shape, dtype):
    n = 1
    for d in shape:
        n *= int(d)
    return n * jnp.dtype(dtype).itemsize


def _compiler_params(working_set_bytes):
    """Batch axis is independent -> "parallel" (lets v7x use both TCs).

    vmem_limit_bytes is sized to the double-buffered working set so v5e's
    16 MiB scoped default never spuriously OOMs, capped well below v7x's
    64 MiB physical VMEM.
    """
    need = 2 * int(working_set_bytes) + (2 << 20)
    return pltpu.CompilerParams(
        dimension_semantics=("parallel",),
        vmem_limit_bytes=int(min(max(need, 16 << 20), 48 << 20)))


def _fold_conv_weight(w_hwio, W):
    """(3,3,Cin,Cout) HWIO weight -> (9*W*Cin, W*Cout) block-diagonal folded weight.

    Row index k = ((dy*3+dx)*W + w)*Cin + c, col index = w*Cout + co; nonzero
    only where the input pixel column w equals the output pixel column, so a
    single matmul against the lane-folded im2col slabs computes the 3x3 conv
    with the result already in folded (H, W*Cout) layout.
    """
    kh, kw, cin, cout = w_hwio.shape
    eye = jnp.eye(W, dtype=w_hwio.dtype)
    big = jnp.einsum("uv,yxio->yxuivo", eye, w_hwio)      # (3,3,W,Cin,W,Cout)
    return big.reshape(kh * kw * W * cin, W * cout)


# ----------------------------------------------------------------------------
# In-kernel helpers
# ----------------------------------------------------------------------------
def _conv3x3_folded(a_fold, w_ref, xpad_ref, patches_ref):
    """3x3 SAME conv of one image, all tensors in lane-folded (H, W*C) layout.

    a_fold      : (H, W*Cin)        bf16 folded activation (channel-minor per pixel)
    w_ref       : (9*W*Cin, W*Cout) bf16 ref, block-diagonal folded weight
    xpad_ref    : (H+2, (W+2)*Cin)  bf16 VMEM scratch (zero border, interior = a)
    patches_ref : (H, 9*W*Cin)      bf16 VMEM scratch (lane-dense im2col slabs)
    returns     : (H, W*Cout)       f32 pre-BN conv output (bias cancelled by BN)
    """
    H, WC = a_fold.shape
    cin = (xpad_ref.shape[1] - WC) // 2
    cols = xpad_ref.shape[1]

    # Border-only zeroing each step (the interior is fully overwritten below).
    # Not gated on program_id==0: with megacore sharding core 1 never sees step 0.
    zrow = jnp.zeros((1, cols), xpad_ref.dtype)
    zcol = jnp.zeros((xpad_ref.shape[0], cin), xpad_ref.dtype)
    xpad_ref[0:1, :] = zrow
    xpad_ref[H + 1:H + 2, :] = zrow
    xpad_ref[:, 0:cin] = zcol
    xpad_ref[:, WC + cin:WC + 2 * cin] = zcol
    xpad_ref[1:H + 1, cin:WC + cin] = a_fold

    # Lane-dense im2col: each 3x3 tap contributes one contiguous (H, W*Cin) slab.
    for dy in range(3):
        for dx in range(3):
            t = dy * 3 + dx
            patches_ref[:, t * WC:(t + 1) * WC] = (
                xpad_ref[dy:dy + H, dx * cin:dx * cin + WC])

    # One MXU matmul, K = 9*W*Cin, bf16 inputs, f32 accumulation.
    return jnp.dot(patches_ref[...], w_ref[...],
                   preferred_element_type=jnp.float32)


def _partial_stats(acc):
    """Per-image partial BN stats in folded form: (2, W*Cout) f32, single store.

    The reduction over W (lane groups) and over images is finished by O(C)
    JAX glue, keeping the batch grid axis fully parallel.
    """
    s = jnp.sum(acc, axis=0, keepdims=True)
    sq = jnp.sum(acc * acc, axis=0, keepdims=True)
    return jnp.concatenate([s, sq], axis=0)


# ----------------------------------------------------------------------------
# Kernels
# ----------------------------------------------------------------------------
def conv_stats_kernel(x_ref, w_ref, y_ref, s_ref, xpad_ref, patches_ref):
    """K1: conv1.  x:(1,H,W*Cin) f32 -> y:(1,H,W*Cmid) bf16 pre-BN, s:(1,2,W*Cmid) f32."""
    acc = _conv3x3_folded(x_ref[0].astype(jnp.bfloat16), w_ref, xpad_ref, patches_ref)
    s_ref[0] = _partial_stats(acc)
    y_ref[0] = acc.astype(y_ref.dtype)


def bn_relu_conv_stats_kernel(y1_ref, sc_ref, sh_ref, w_ref,
                              y_ref, s_ref, xpad_ref, patches_ref):
    """K2: fused BN1-affine + ReLU on the folded pre-activation, then conv2."""
    # sc/sh are per-channel scale/shift pre-tiled across W -> lane-dense elementwise.
    a = jnp.maximum(y1_ref[0].astype(jnp.float32) * sc_ref[...] + sh_ref[...], 0.0)
    acc = _conv3x3_folded(a.astype(jnp.bfloat16), w_ref, xpad_ref, patches_ref)
    s_ref[0] = _partial_stats(acc)
    y_ref[0] = acc.astype(y_ref.dtype)


def bn_relu_kernel(y_ref, sc_ref, sh_ref, o_ref):
    """K3: final BN2-affine + ReLU; lane-dense folded f32 output."""
    o_ref[0] = jnp.maximum(y_ref[0].astype(jnp.float32) * sc_ref[...] + sh_ref[...], 0.0)


# ----------------------------------------------------------------------------
# pallas_call wrappers
# ----------------------------------------------------------------------------
def _conv_stats(x_fold, wbig, H, W, cin, cout):
    N = x_fold.shape[0]
    scr = [((H + 2, (W + 2) * cin), jnp.bfloat16), ((H, 9 * W * cin), jnp.bfloat16)]
    ws = (_nbytes((1, H, W * cin), x_fold.dtype) + _nbytes(wbig.shape, wbig.dtype)
          + _nbytes((1, H, W * cout), jnp.bfloat16) + _nbytes((1, 2, W * cout), jnp.float32)
          + sum(_nbytes(s, d) for s, d in scr))
    return pl.pallas_call(
        conv_stats_kernel,
        grid=(N,),
        in_specs=[
            pl.BlockSpec((1, H, W * cin), lambda n: (n, 0, 0)),
            # Invariant weight (constant index_map => fetched once).
            # TODO(synk): pipeline_mode=pl.Buffered(1) would drop its 2nd VMEM buffer.
            pl.BlockSpec(wbig.shape, lambda n: (0, 0)),
        ],
        out_specs=[
            pl.BlockSpec((1, H, W * cout), lambda n: (n, 0, 0)),
            pl.BlockSpec((1, 2, W * cout), lambda n: (n, 0, 0)),
        ],
        out_shape=(
            jax.ShapeDtypeStruct((N, H, W * cout), jnp.bfloat16),
            jax.ShapeDtypeStruct((N, 2, W * cout), jnp.float32),
        ),
        scratch_shapes=[pltpu.VMEM(s, d) for s, d in scr],
        compiler_params=_compiler_params(ws),
    )(x_fold, wbig)


def _bn_relu_conv_stats(y1, scale1, shift1, wbig, H, W, cin, cout):
    N = y1.shape[0]
    scr = [((H + 2, (W + 2) * cin), jnp.bfloat16), ((H, 9 * W * cin), jnp.bfloat16)]
    ws = (_nbytes((1, H, W * cin), y1.dtype) + 2 * _nbytes((1, W * cin), jnp.float32)
          + _nbytes(wbig.shape, wbig.dtype) + _nbytes((1, H, W * cout), jnp.bfloat16)
          + _nbytes((1, 2, W * cout), jnp.float32) + sum(_nbytes(s, d) for s, d in scr))
    return pl.pallas_call(
        bn_relu_conv_stats_kernel,
        grid=(N,),
        in_specs=[
            pl.BlockSpec((1, H, W * cin), lambda n: (n, 0, 0)),
            pl.BlockSpec((1, W * cin), lambda n: (0, 0)),
            pl.BlockSpec((1, W * cin), lambda n: (0, 0)),
            pl.BlockSpec(wbig.shape, lambda n: (0, 0)),
        ],
        out_specs=[
            pl.BlockSpec((1, H, W * cout), lambda n: (n, 0, 0)),
            pl.BlockSpec((1, 2, W * cout), lambda n: (n, 0, 0)),
        ],
        out_shape=(
            jax.ShapeDtypeStruct((N, H, W * cout), jnp.bfloat16),
            jax.ShapeDtypeStruct((N, 2, W * cout), jnp.float32),
        ),
        scratch_shapes=[pltpu.VMEM(s, d) for s, d in scr],
        compiler_params=_compiler_params(ws),
    )(y1, scale1, shift1, wbig)


def _bn_relu(y, scale, shift, H, W, cout):
    N = y.shape[0]
    ws = (_nbytes((1, H, W * cout), y.dtype) + 2 * _nbytes((1, W * cout), jnp.float32)
          + _nbytes((1, H, W * cout), jnp.float32))
    return pl.pallas_call(
        bn_relu_kernel,
        grid=(N,),
        in_specs=[
            pl.BlockSpec((1, H, W * cout), lambda n: (n, 0, 0)),
            pl.BlockSpec((1, W * cout), lambda n: (0, 0)),
            pl.BlockSpec((1, W * cout), lambda n: (0, 0)),
        ],
        out_specs=pl.BlockSpec((1, H, W * cout), lambda n: (n, 0, 0)),
        out_shape=jax.ShapeDtypeStruct((N, H, W * cout), jnp.float32),
        compiler_params=_compiler_params(ws),
    )(y, scale, shift)


# ----------------------------------------------------------------------------
# BN stats glue (tiny: O(W*C) work, keeps the batch grid axis parallel)
# ----------------------------------------------------------------------------
def _bn_scale_shift(partial_stats, gamma, beta, count, W):
    """Combine per-image folded (sum, sumsq) into per-channel BN scale/shift,
    returned pre-tiled across W for the lane-folded layout.

    Biased batch variance via E[x^2] - E[x]^2 in f32 (clamped >= 0); use a
    Welford / two-pass reduction if reused with very large magnitudes/counts.
    """
    C = gamma.shape[0]
    s = jnp.sum(partial_stats, axis=0)                 # (2, W*C)
    s = s.reshape(2, W, C).sum(axis=1)                 # (2, C)
    mean = s[0] / count
    var = jnp.maximum(s[1] / count - mean * mean, 0.0)
    scale = gamma * lax.rsqrt(var + EPS)
    shift = beta - mean * scale
    return (jnp.tile(scale, W).reshape(1, W * C),
            jnp.tile(shift, W).reshape(1, W * C))


# ----------------------------------------------------------------------------
# Module forward + params
# ----------------------------------------------------------------------------
def double_conv(x_nchw, params):
    """Forward pass of DoubleConv; input/output are NCHW like PyTorch."""
    N, Cin, H, W = x_nchw.shape
    Cmid = params["w1"].shape[-1]
    Cout = params["w2"].shape[-1]

    # Single layout change at the module boundary; the reshape to the lane-
    # folded (N, H, W*C) form is free (contiguous).  A full UNet would stay
    # NHWC/folded end-to-end and drop the transposes entirely.
    x_fold = jnp.transpose(x_nchw, (0, 2, 3, 1)).reshape(N, H, W * Cin)

    # Lane-folded block-diagonal im2col weights, bf16 for the MXU (f32 accum).
    # Conv biases (params["b1"/"b2"]) are intentionally unused: training-mode
    # BatchNorm subtracts the batch mean right after the conv, which cancels a
    # per-channel bias exactly.
    w1 = _fold_conv_weight(params["w1"], W).astype(jnp.bfloat16)
    w2 = _fold_conv_weight(params["w2"], W).astype(jnp.bfloat16)

    count = N * H * W

    y1, s1 = _conv_stats(x_fold, w1, H, W, Cin, Cmid)
    sc1, sh1 = _bn_scale_shift(s1, params["g1"], params["beta1"], count, W)

    y2, s2 = _bn_relu_conv_stats(y1, sc1, sh1, w2, H, W, Cmid, Cout)
    sc2, sh2 = _bn_scale_shift(s2, params["g2"], params["beta2"], count, W)

    out = _bn_relu(y2, sc2, sh2, H, W, Cout)        # (N, H, W*Cout) f32, lane-dense
    out = out.reshape(N, H, W, Cout)                # free (contiguous split)
    # TODO(synk): fuse this NHWC->NCHW transpose into K3 (XLU transpose of the
    # folded tile) / keep NHWC end-to-end in a full UNet; left to XLA here.
    return jnp.transpose(out, (0, 3, 1, 2))


def init_double_conv_params(key, in_channels, out_channels, mid_channels=None):
    """Deterministic synthetic init matching the PyTorch module's shapes."""
    if not mid_channels:
        mid_channels = out_channels
    k1, k2, k3, k4 = jax.random.split(key, 4)

    def conv_init(kw, kb, cin, cout):
        fan_in = cin * 9
        bound = 1.0 / jnp.sqrt(fan_in)
        # PyTorch layout (Cout, Cin, 3, 3) -> HWIO (3, 3, Cin, Cout).
        w = jax.random.uniform(kw, (cout, cin, 3, 3), jnp.float32, -bound, bound)
        w = jnp.transpose(w, (2, 3, 1, 0))
        b = jax.random.uniform(kb, (cout,), jnp.float32, -bound, bound)
        return w, b

    w1, b1 = conv_init(k1, k2, in_channels, mid_channels)
    w2, b2 = conv_init(k3, k4, mid_channels, out_channels)
    return dict(
        w1=w1, b1=b1,
        g1=jnp.ones((mid_channels,), jnp.float32),
        beta1=jnp.zeros((mid_channels,), jnp.float32),
        w2=w2, b2=b2,
        g2=jnp.ones((out_channels,), jnp.float32),
        beta2=jnp.zeros((out_channels,), jnp.float32),
    )


def _reference_double_conv(x_nchw, params):
    """Pure-JAX reference mirroring the kernel's precision choices:
    bf16 conv inputs/weights with f32 accumulation, f32 batch stats computed
    from the f32 conv output, and bf16 rounding of the pre-BN intermediate
    (matching the bf16 HBM intermediates the kernels store)."""
    def stage(x_nhwc, w, gamma, beta):
        y = lax.conv_general_dilated(
            x_nhwc.astype(jnp.bfloat16), w.astype(jnp.bfloat16),
            window_strides=(1, 1), padding="SAME",
            dimension_numbers=("NHWC", "HWIO", "NHWC"),
            preferred_element_type=jnp.float32)
        mean = jnp.mean(y, axis=(0, 1, 2))
        var = jnp.mean(jnp.square(y - mean), axis=(0, 1, 2))
        yq = y.astype(jnp.bfloat16).astype(jnp.float32)       # mirror bf16 intermediate
        yq = (yq - mean) * lax.rsqrt(var + EPS) * gamma + beta
        return jnp.maximum(yq, 0.0)

    x = jnp.transpose(x_nchw, (0, 2, 3, 1))
    a = stage(x, params["w1"], params["g1"], params["beta1"])
    a = stage(a, params["w2"], params["g2"], params["beta2"])
    return jnp.transpose(a, (0, 3, 1, 2))


if __name__ == "__main__":
    key = jax.random.PRNGKey(0)
    kx, kp = jax.random.split(key)

    N, C_IN, C_OUT, H, W = 2, 4, 8, 16, 16
    x = jax.random.normal(kx, (N, C_IN, H, W), jnp.float32)
    params = init_double_conv_params(kp, C_IN, C_OUT)

    out = jax.block_until_ready(jax.jit(double_conv)(x, params))

    assert out.shape == (N, C_OUT, H, W)
    assert bool(jnp.all(jnp.isfinite(out)))
    assert bool(jnp.all(out >= 0.0))              # ReLU output is non-negative

    # Both paths use bf16 conv inputs / bf16 pre-BN intermediates with f32
    # accumulation and f32 stats; tolerance covers accumulation-order effects.
    ref = _reference_double_conv(x, params)
    max_err = float(jnp.max(jnp.abs(out - ref)))
    assert max_err < 5e-2, f"mismatch vs reference: {max_err}"

    print("KERNEL_OK")
</pallas_src>

<mosaic_0001>
module attributes {stable_mosaic.version = 11 : i64} {
  func.func @conv_stats_kernel(%arg0: i32, %arg1: memref<1x16x64xf32, #tpu.memory_space<vmem>>, %arg2: memref<576x128xbf16, #tpu.memory_space<vmem>>, %arg3: memref<1x16x128xbf16, #tpu.memory_space<vmem>>, %arg4: memref<1x2x128xf32, #tpu.memory_space<vmem>>, %arg5: memref<18x72xbf16, #tpu.memory_space<vmem>>, %arg6: memref<16x576xbf16, #tpu.memory_space<vmem>>) attributes {dimension_semantics = [#tpu.dimension_semantics<parallel>], iteration_bounds = array<i64: 2>, scalar_prefetch = 0 : i64, scratch_operands = 2 : i64, tpu.core_type = #tpu.core_type<tc>, window_params = [{transform_indices = @transform_0, window_bounds = array<i64: 1, 16, 64>}, {pipeline_mode = #tpu.pipeline_mode<synchronous>, transform_indices = @transform_1, window_bounds = array<i64: 576, 128>}, {transform_indices = @transform_2, window_bounds = array<i64: 1, 16, 128>}, {transform_indices = @transform_3, window_bounds = array<i64: 1, 2, 128>}]} {
    %c0 = arith.constant 0 : index
    %c0_0 = arith.constant 0 : index
    %c0_1 = arith.constant 0 : index
    %0 = vector.load %arg1[%c0, %c0_0, %c0_1] : memref<1x16x64xf32, #tpu.memory_space<vmem>>, vector<1x16x64xf32>
    %1 = vector.shape_cast %0 : vector<1x16x64xf32> to vector<16x64xf32>
    %2 = arith.truncf %1 : vector<16x64xf32> to vector<16x64xbf16>
    %cst = arith.constant 0.000000e+00 : bf16
    %3 = vector.broadcast %cst : bf16 to vector<1x72xbf16>
    %cst_2 = arith.constant 0.000000e+00 : bf16
    %4 = vector.broadcast %cst_2 : bf16 to vector<18x4xbf16>
    %c0_3 = arith.constant 0 : index
    %c0_4 = arith.constant 0 : index
    %5 = vector.load %arg5[%c0_3, %c0_4] : memref<18x72xbf16, #tpu.memory_space<vmem>>, vector<1x72xbf16>
    tpu.vector_store %arg5[%c0_3, %c0_4], %3 {strides = array<i32>} : memref<18x72xbf16, #tpu.memory_space<vmem>>, vector<1x72xbf16>,
    %c17 = arith.constant 17 : index
    %c0_5 = arith.constant 0 : index
    %6 = vector.load %arg5[%c17, %c0_5] : memref<18x72xbf16, #tpu.memory_space<vmem>>, vector<1x72xbf16>
    tpu.vector_store %arg5[%c17, %c0_5], %3 {strides = array<i32>} : memref<18x72xbf16, #tpu.memory_space<vmem>>, vector<1x72xbf16>,
    %c0_6 = arith.constant 0 : index
    %c0_7 = arith.constant 0 : index
    %7 = vector.load %arg5[%c0_6, %c0_7] : memref<18x72xbf16, #tpu.memory_space<vmem>>, vector<18x4xbf16>
    tpu.vector_store %arg5[%c0_6, %c0_7], %4 {strides = array<i32>} : memref<18x72xbf16, #tpu.memory_space<vmem>>, vector<18x4xbf16>,
    %c0_8 = arith.constant 0 : index
    %c68 = arith.constant 68 : index
    %8 = vector.load %arg5[%c0_8, %c68] : memref<18x72xbf16, #tpu.memory_space<vmem>>, vector<18x4xbf16>
    tpu.vector_store %arg5[%c0_8, %c68], %4 {strides = array<i32>} : memref<18x72xbf16, #tpu.memory_space<vmem>>, vector<18x4xbf16>,
    %c1 = arith.constant 1 : index
    %c4 = arith.constant 4 : index
    %9 = vector.load %arg5[%c1, %c4] : memref<18x72xbf16, #tpu.memory_space<vmem>>, vector<16x64xbf16>
    tpu.vector_store %arg5[%c1, %c4], %2 {strides = array<i32>} : memref<18x72xbf16, #tpu.memory_space<vmem>>, vector<16x64xbf16>,
    %c0_9 = arith.constant 0 : index
    %c0_10 = arith.constant 0 : index
    %10 = vector.load %arg5[%c0_9, %c0_10] : memref<18x72xbf16, #tpu.memory_space<vmem>>, vector<16x64xbf16>
    %c0_11 = arith.constant 0 : index
    %c0_12 = arith.constant 0 : index
    %11 = vector.load %arg6[%c0_11, %c0_12] : memref<16x576xbf16, #tpu.memory_space<vmem>>, vector<16x64xbf16>
    tpu.vector_store %arg6[%c0_11, %c0_12], %10 {strides = array<i32>} : memref<16x576xbf16, #tpu.memory_space<vmem>>, vector<16x64xbf16>,
    %c0_13 = arith.constant 0 : index
    %c4_14 = arith.constant 4 : index
    %12 = vector.load %arg5[%c0_13, %c4_14] : memref<18x72xbf16, #tpu.memory_space<vmem>>, vector<16x64xbf16>
    %c0_15 = arith.constant 0 : index
    %c64 = arith.constant 64 : index
    %13 = vector.load %arg6[%c0_15, %c64] : memref<16x576xbf16, #tpu.memory_space<vmem>>, vector<16x64xbf16>
    tpu.vector_store %arg6[%c0_15, %c64], %12 {strides = array<i32>} : memref<16x576xbf16, #tpu.memory_space<vmem>>, vector<16x64xbf16>,
    %c0_16 = arith.constant 0 : index
    %c8 = arith.constant 8 : index
    %14 = vector.load %arg5[%c0_16, %c8] : memref<18x72xbf16, #tpu.memory_space<vmem>>, vector<16x64xbf16>
    %c0_17 = arith.constant 0 : index
    %c128 = arith.constant 128 : index
    %15 = vector.load %arg6[%c0_17, %c128] : memref<16x576xbf16, #tpu.memory_space<vmem>>, vector<16x64xbf16>
    tpu.vector_store %arg6[%c0_17, %c128], %14 {strides = array<i32>} : memref<16x576xbf16, #tpu.memory_space<vmem>>, vector<16x64xbf16>,
    %c1_18 = arith.constant 1 : index
    %c0_19 = arith.constant 0 : index
    %16 = vector.load %arg5[%c1_18, %c0_19] : memref<18x72xbf16, #tpu.memory_space<vmem>>, vector<16x64xbf16>
    %c0_20 = arith.constant 0 : index
    %c192 = arith.constant 192 : index
    %17 = vector.load %arg6[%c0_20, %c192] : memref<16x576xbf16, #tpu.memory_space<vmem>>, vector<16x64xbf16>
    tpu.vector_store %arg6[%c0_20, %c192], %16 {strides = array<i32>} : memref<16x576xbf16, #tpu.memory_space<vmem>>, vector<16x64xbf16>,
    %c1_21 = arith.constant 1 : index
    %c4_22 = arith.constant 4 : index
    %18 = vector.load %arg5[%c1_21, %c4_22] : memref<18x72xbf16, #tpu.memory_space<vmem>>, vector<16x64xbf16>
    %c0_23 = arith.constant 0 : index
    %c256 = arith.constant 256 : index
    %19 = vector.load %arg6[%c0_23, %c256] : memref<16x576xbf16, #tpu.memory_space<vmem>>, vector<16x64xbf16>
    tpu.vector_store %arg6[%c0_23, %c256], %18 {strides = array<i32>} : memref<16x576xbf16, #tpu.memory_space<vmem>>, vector<16x64xbf16>,
    %c1_24 = arith.constant 1 : index
    %c8_25 = arith.constant 8 : index
    %20 = vector.load %arg5[%c1_24, %c8_25] : memref<18x72xbf16, #tpu.memory_space<vmem>>, vector<16x64xbf16>
    %c0_26 = arith.constant 0 : index
    %c320 = arith.constant 320 : index
    %21 = vector.load %arg6[%c0_26, %c320] : memref<16x576xbf16, #tpu.memory_space<vmem>>, vector<16x64xbf16>
    tpu.vector_store %arg6[%c0_26, %c320], %20 {strides = array<i32>} : memref<16x576xbf16, #tpu.memory_space<vmem>>, vector<16x64xbf16>,
    %c2 = arith.constant 2 : index
    %c0_27 = arith.constant 0 : index
    %22 = vector.load %arg5[%c2, %c0_27] : memref<18x72xbf16, #tpu.memory_space<vmem>>, vector<16x64xbf16>
    %c0_28 = arith.constant 0 : index
    %c384 = arith.constant 384 : index
    %23 = vector.load %arg6[%c0_28, %c384] : memref<16x576xbf16, #tpu.memory_space<vmem>>, vector<16x64xbf16>
    tpu.vector_store %arg6[%c0_28, %c384], %22 {strides = array<i32>} : memref<16x576xbf16, #tpu.memory_space<vmem>>, vector<16x64xbf16>,
    %c2_29 = arith.constant 2 : index
    %c4_30 = arith.constant 4 : index
    %24 = vector.load %arg5[%c2_29, %c4_30] : memref<18x72xbf16, #tpu.memory_space<vmem>>, vector<16x64xbf16>
    %c0_31 = arith.constant 0 : index
    %c448 = arith.constant 448 : index
    %25 = vector.load %arg6[%c0_31, %c448] : memref<16x576xbf16, #tpu.memory_space<vmem>>, vector<16x64xbf16>
    tpu.vector_store %arg6[%c0_31, %c448], %24 {strides = array<i32>} : memref<16x576xbf16, #tpu.memory_space<vmem>>, vector<16x64xbf16>,
    %c2_32 = arith.constant 2 : index
    %c8_33 = arith.constant 8 : index
    %26 = vector.load %arg5[%c2_32, %c8_33] : memref<18x72xbf16, #tpu.memory_space<vmem>>, vector<16x64xbf16>
    %c0_34 = arith.constant 0 : index
    %c512 = arith.constant 512 : index
    %27 = vector.load %arg6[%c0_34, %c512] : memref<16x576xbf16, #tpu.memory_space<vmem>>, vector<16x64xbf16>
    tpu.vector_store %arg6[%c0_34, %c512], %26 {strides = array<i32>} : memref<16x576xbf16, #tpu.memory_space<vmem>>, vector<16x64xbf16>,
    %c0_35 = arith.constant 0 : index
    %c0_36 = arith.constant 0 : index
    %28 = vector.load %arg6[%c0_35, %c0_36] : memref<16x576xbf16, #tpu.memory_space<vmem>>, vector<16x576xbf16>
    %c0_37 = arith.constant 0 : index
    %c0_38 = arith.constant 0 : index
    %29 = vector.load %arg2[%c0_37, %c0_38] : memref<576x128xbf16, #tpu.memory_space<vmem>>, vector<576x128xbf16>
    %cst_39 = arith.constant dense<0.000000e+00> : vector<16x128xf32>
    %30 = tpu.matmul %28, %29, %cst_39 {dimension_numbers = #tpu.dot_dimension_numbers<[1], [0], [0], [1], [0, 0, 1, 1], [], []>} : vector<16x576xbf16>, vector<576x128xbf16>, vector<16x128xf32> -> vector<16x128xf32>
    %cst_40 = arith.constant dense<0.000000e+00> : vector<128xf32>
    %31 = vector.multi_reduction <add>, %30, %cst_40 [0] : vector<16x128xf32> to vector<128xf32>
    %32 = vector.shape_cast %31 : vector<128xf32> to vector<1x128xf32>
    %33 = arith.mulf %30, %30 : vector<16x128xf32>
    %cst_41 = arith.constant dense<0.000000e+00> : vector<128xf32>
    %34 = vector.multi_reduction <add>, %33, %cst_41 [0] : vector<16x128xf32> to vector<128xf32>
    %35 = vector.shape_cast %34 : vector<128xf32> to vector<1x128xf32>
    %36 = tpu.concatenate %32, %35 in 0 : vector<1x128xf32>, vector<1x128xf32> -> vector<2x128xf32>
    %c0_42 = arith.constant 0 : index
    %c0_43 = arith.constant 0 : index
    %c0_44 = arith.constant 0 : index
    %37 = vector.load %arg4[%c0_42, %c0_43, %c0_44] : memref<1x2x128xf32, #tpu.memory_space<vmem>>, vector<1x2x128xf32>
    %38 = vector.shape_cast %37 : vector<1x2x128xf32> to vector<2x128xf32>
    %39 = vector.shape_cast %36 : vector<2x128xf32> to vector<1x2x128xf32>
    tpu.vector_store %arg4[%c0_42, %c0_43, %c0_44], %39 {strides = array<i32>} : memref<1x2x128xf32, #tpu.memory_space<vmem>>, vector<1x2x128xf32>,
    %40 = arith.truncf %30 : vector<16x128xf32> to vector<16x128xbf16>
    %c0_45 = arith.constant 0 : index
    %c0_46 = arith.constant 0 : index
    %c0_47 = arith.constant 0 : index
    %41 = vector.load %arg3[%c0_45, %c0_46, %c0_47] : memref<1x16x128xbf16, #tpu.memory_space<vmem>>, vector<1x16x128xbf16>
    %42 = vector.shape_cast %41 : vector<1x16x128xbf16> to vector<16x128xbf16>
    %43 = vector.shape_cast %40 : vector<16x128xbf16> to vector<1x16x128xbf16>
    tpu.vector_store %arg3[%c0_45, %c0_46, %c0_47], %43 {strides = array<i32>} : memref<1x16x128xbf16, #tpu.memory_space<vmem>>, vector<1x16x128xbf16>,
    return
  }
  func.func @transform_0(%arg0: i32) -> (i32, i32, i32) {
    %c0_i32 = arith.constant 0 : i32
    %c0_i32_0 = arith.constant 0 : i32
    %c0_i32_1 = arith.constant 0 : i32
    return %arg0, %c0_i32, %c0_i32_0 : i32, i32, i32
  }
  func.func @transform_1(%arg0: i32) -> (i32, i32) {
    %c0_i32 = arith.constant 0 : i32
    %c0_i32_0 = arith.constant 0 : i32
    %c0_i32_1 = arith.constant 0 : i32
    return %c0_i32, %c0_i32_0 : i32, i32
  }
  func.func @transform_2(%arg0: i32) -> (i32, i32, i32) {
    %c0_i32 = arith.constant 0 : i32
    %c0_i32_0 = arith.constant 0 : i32
    %c0_i32_1 = arith.constant 0 : i32
    return %arg0, %c0_i32, %c0_i32_0 : i32, i32, i32
  }
  func.func @transform_3(%arg0: i32) -> (i32, i32, i32) {
    %c0_i32 = arith.constant 0 : i32
    %c0_i32_0 = arith.constant 0 : i32
    %c0_i32_1 = arith.constant 0 : i32
    return %arg0, %c0_i32, %c0_i32_0 : i32, i32, i32
  }
}

module attributes {stable_mosaic.version = 11 : i64} {
  func.func @bn_relu_conv_stats_kernel(%arg0: i32, %arg1: memref<1x16x128xbf16, #tpu.memory_space<vmem>>, %arg2: memref<1x128xf32, #tpu.memory_space<vmem>>, %arg3: memref<1x128xf32, #tpu.memory_space<vmem>>, %arg4: memref<1152x128xbf16, #tpu.memory_space<vmem>>, %arg5: memref<1x16x128xbf16, #tpu.memory_space<vmem>>, %arg6: memref<1x2x128xf32, #tpu.memory_space<vmem>>, %arg7: memref<18x144xbf16, #tpu.memory_space<vmem>>, %arg8: memref<16x1152xbf16, #tpu.memory_space<vmem>>) attributes {dimension_semantics = [#tpu.dimension_semantics<parallel>], iteration_bounds = array<i64: 2>, scalar_prefetch = 0 : i64, scratch_operands = 2 : i64, tpu.core_type = #tpu.core_type<tc>, window_params = [{transform_indices = @transform_0, window_bounds = array<i64: 1, 16, 128>}, {pipeline_mode = #tpu.pipeline_mode<synchronous>, transform_indices = @transform_1, window_bounds = array<i64: 1, 128>}, {pipeline_mode = #tpu.pipeline_mode<synchronous>, transform_indices = @transform_2, window_bounds = array<i64: 1, 128>}, {pipeline_mode = #tpu.pipeline_mode<synchronous>, transform_indices = @transform_3, window_bounds = array<i64: 1152, 128>}, {transform_indices = @transform_4, window_bounds = array<i64: 1, 16, 128>}, {transform_indices = @transform_5, window_bounds = array<i64: 1, 2, 128>}]} {
    %c0 = arith.constant 0 : index
    %c0_0 = arith.constant 0 : index
    %c0_1 = arith.constant 0 : index
    %0 = vector.load %arg1[%c0, %c0_0, %c0_1] : memref<1x16x128xbf16, #tpu.memory_space<vmem>>, vector<1x16x128xbf16>
    %1 = vector.shape_cast %0 : vector<1x16x128xbf16> to vector<16x128xbf16>
    %2 = arith.extf %1 : vector<16x128xbf16> to vector<16x128xf32>
    %c0_2 = arith.constant 0 : index
    %c0_3 = arith.constant 0 : index
    %3 = vector.load %arg2[%c0_2, %c0_3] : memref<1x128xf32, #tpu.memory_space<vmem>>, vector<1x128xf32>
    %4 = vector.broadcast %3 : vector<1x128xf32> to vector<16x128xf32>
    %5 = arith.mulf %2, %4 : vector<16x128xf32>
    %c0_4 = arith.constant 0 : index
    %c0_5 = arith.constant 0 : index
    %6 = vector.load %arg3[%c0_4, %c0_5] : memref<1x128xf32, #tpu.memory_space<vmem>>, vector<1x128xf32>
    %7 = vector.broadcast %6 : vector<1x128xf32> to vector<16x128xf32>
    %8 = arith.addf %5, %7 : vector<16x128xf32>
    %cst = arith.constant 0.000000e+00 : f32
    %9 = vector.broadcast %cst : f32 to vector<16x128xf32>
    %10 = arith.maximumf %8, %9 : vector<16x128xf32>
    %11 = arith.truncf %10 : vector<16x128xf32> to vector<16x128xbf16>
    %cst_6 = arith.constant 0.000000e+00 : bf16
    %12 = vector.broadcast %cst_6 : bf16 to vector<1x144xbf16>
    %cst_7 = arith.constant 0.000000e+00 : bf16
    %13 = vector.broadcast %cst_7 : bf16 to vector<18x8xbf16>
    %c0_8 = arith.constant 0 : index
    %c0_9 = arith.constant 0 : index
    %14 = vector.load %arg7[%c0_8, %c0_9] : memref<18x144xbf16, #tpu.memory_space<vmem>>, vector<1x144xbf16>
    tpu.vector_store %arg7[%c0_8, %c0_9], %12 {strides = array<i32>} : memref<18x144xbf16, #tpu.memory_space<vmem>>, vector<1x144xbf16>,
    %c17 = arith.constant 17 : index
    %c0_10 = arith.constant 0 : index
    %15 = vector.load %arg7[%c17, %c0_10] : memref<18x144xbf16, #tpu.memory_space<vmem>>, vector<1x144xbf16>
    tpu.vector_store %arg7[%c17, %c0_10], %12 {strides = array<i32>} : memref<18x144xbf16, #tpu.memory_space<vmem>>, vector<1x144xbf16>,
    %c0_11 = arith.constant 0 : index
    %c0_12 = arith.constant 0 : index
    %16 = vector.load %arg7[%c0_11, %c0_12] : memref<18x144xbf16, #tpu.memory_space<vmem>>, vector<18x8xbf16>
    tpu.vector_store %arg7[%c0_11, %c0_12], %13 {strides = array<i32>} : memref<18x144xbf16, #tpu.memory_space<vmem>>, vector<18x8xbf16>,
    %c0_13 = arith.constant 0 : index
    %c136 = arith.constant 136 : index
    %17 = vector.load %arg7[%c0_13, %c136] : memref<18x144xbf16, #tpu.memory_space<vmem>>, vector<18x8xbf16>
    tpu.vector_store %arg7[%c0_13, %c136], %13 {strides = array<i32>} : memref<18x144xbf16, #tpu.memory_space<vmem>>, vector<18x8xbf16>,
    %c1 = arith.constant 1 : index
    %c8 = arith.constant 8 : index
    %18 = vector.load %arg7[%c1, %c8] : memref<18x144xbf16, #tpu.memory_space<vmem>>, vector<16x128xbf16>
    tpu.vector_store %arg7[%c1, %c8], %11 {strides = array<i32>} : memref<18x144xbf16, #tpu.memory_space<vmem>>, vector<16x128xbf16>,
    %c0_14 = arith.constant 0 : index
    %c0_15 = arith.constant 0 : index
    %19 = vector.load %arg7[%c0_14, %c0_15] : memref<18x144xbf16, #tpu.memory_space<vmem>>, vector<16x128xbf16>
    %c0_16 = arith.constant 0 : index
    %c0_17 = arith.constant 0 : index
    %20 = vector.load %arg8[%c0_16, %c0_17] : memref<16x1152xbf16, #tpu.memory_space<vmem>>, vector<16x128xbf16>
    tpu.vector_store %arg8[%c0_16, %c0_17], %19 {strides = array<i32>} : memref<16x1152xbf16, #tpu.memory_space<vmem>>, vector<16x128xbf16>,
    %c0_18 = arith.constant 0 : index
    %c8_19 = arith.constant 8 : index
    %21 = vector.load %arg7[%c0_18, %c8_19] : memref<18x144xbf16, #tpu.memory_space<vmem>>, vector<16x128xbf16>
    %c0_20 = arith.constant 0 : index
    %c128 = arith.constant 128 : index
    %22 = vector.load %arg8[%c0_20, %c128] : memref<16x1152xbf16, #tpu.memory_space<vmem>>, vector<16x128xbf16>
    tpu.vector_store %arg8[%c0_20, %c128], %21 {strides = array<i32>} : memref<16x1152xbf16, #tpu.memory_space<vmem>>, vector<16x128xbf16>,
    %c0_21 = arith.constant 0 : index
    %c16 = arith.constant 16 : index
    %23 = vector.load %arg7[%c0_21, %c16] : memref<18x144xbf16, #tpu.memory_space<vmem>>, vector<16x128xbf16>
    %c0_22 = arith.constant 0 : index
    %c256 = arith.constant 256 : index
    %24 = vector.load %arg8[%c0_22, %c256] : memref<16x1152xbf16, #tpu.memory_space<vmem>>, vector<16x128xbf16>
    tpu.vector_store %arg8[%c0_22, %c256], %23 {strides = array<i32>} : memref<16x1152xbf16, #tpu.memory_space<vmem>>, vector<16x128xbf16>,
    %c1_23 = arith.constant 1 : index
    %c0_24 = arith.constant 0 : index
    %25 = vector.load %arg7[%c1_23, %c0_24] : memref<18x144xbf16, #tpu.memory_space<vmem>>, vector<16x128xbf16>
    %c0_25 = arith.constant 0 : index
    %c384 = arith.constant 384 : index
    %26 = vector.load %arg8[%c0_25, %c384] : memref<16x1152xbf16, #tpu.memory_space<vmem>>, vector<16x128xbf16>
    tpu.vector_store %arg8[%c0_25, %c384], %25 {strides = array<i32>} : memref<16x1152xbf16, #tpu.memory_space<vmem>>, vector<16x128xbf16>,
    %c1_26 = arith.constant 1 : index
    %c8_27 = arith.constant 8 : index
    %27 = vector.load %arg7[%c1_26, %c8_27] : memref<18x144xbf16, #tpu.memory_space<vmem>>, vector<16x128xbf16>
    %c0_28 = arith.constant 0 : index
    %c512 = arith.constant 512 : index
    %28 = vector.load %arg8[%c0_28, %c512] : memref<16x1152xbf16, #tpu.memory_space<vmem>>, vector<16x128xbf16>
    tpu.vector_store %arg8[%c0_28, %c512], %27 {strides = array<i32>} : memref<16x1152xbf16, #tpu.memory_space<vmem>>, vector<16x128xbf16>,
    %c1_29 = arith.constant 1 : index
    %c16_30 = arith.constant 16 : index
    %29 = vector.load %arg7[%c1_29, %c16_30] : memref<18x144xbf16, #tpu.memory_space<vmem>>, vector<16x128xbf16>
    %c0_31 = arith.constant 0 : index
    %c640 = arith.constant 640 : index
    %30 = vector.load %arg8[%c0_31, %c640] : memref<16x1152xbf16, #tpu.memory_space<vmem>>, vector<16x128xbf16>
    tpu.vector_store %arg8[%c0_31, %c640], %29 {strides = array<i32>} : memref<16x1152xbf16, #tpu.memory_space<vmem>>, vector<16x128xbf16>,
    %c2 = arith.constant 2 : index
    %c0_32 = arith.constant 0 : index
    %31 = vector.load %arg7[%c2, %c0_32] : memref<18x144xbf16, #tpu.memory_space<vmem>>, vector<16x128xbf16>
    %c0_33 = arith.constant 0 : index
    %c768 = arith.constant 768 : index
    %32 = vector.load %arg8[%c0_33, %c768] : memref<16x1152xbf16, #tpu.memory_space<vmem>>, vector<16x128xbf16>
    tpu.vector_store %arg8[%c0_33, %c768], %31 {strides = array<i32>} : memref<16x1152xbf16, #tpu.memory_space<vmem>>, vector<16x128xbf16>,
    %c2_34 = arith.constant 2 : index
    %c8_35 = arith.constant 8 : index
    %33 = vector.load %arg7[%c2_34, %c8_35] : memref<18x144xbf16, #tpu.memory_space<vmem>>, vector<16x128xbf16>
    %c0_36 = arith.constant 0 : index
    %c896 = arith.constant 896 : index
    %34 = vector.load %arg8[%c0_36, %c896] : memref<16x1152xbf16, #tpu.memory_space<vmem>>, vector<16x128xbf16>
    tpu.vector_store %arg8[%c0_36, %c896], %33 {strides = array<i32>} : memref<16x1152xbf16, #tpu.memory_space<vmem>>, vector<16x128xbf16>,
    %c2_37 = arith.constant 2 : index
    %c16_38 = arith.constant 16 : index
    %35 = vector.load %arg7[%c2_37, %c16_38] : memref<18x144xbf16, #tpu.memory_space<vmem>>, vector<16x128xbf16>
    %c0_39 = arith.constant 0 : index
    %c1024 = arith.constant 1024 : index
    %36 = vector.load %arg8[%c0_39, %c1024] : memref<16x1152xbf16, #tpu.memory_space<vmem>>, vector<16x128xbf16>
    tpu.vector_store %arg8[%c0_39, %c1024], %35 {strides = array<i32>} : memref<16x1152xbf16, #tpu.memory_space<vmem>>, vector<16x128xbf16>,
    %c0_40 = arith.constant 0 : index
    %c0_41 = arith.constant 0 : index
    %37 = vector.load %arg8[%c0_40, %c0_41] : memref<16x1152xbf16, #tpu.memory_space<vmem>>, vector<16x1152xbf16>
    %c0_42 = arith.constant 0 : index
    %c0_43 = arith.constant 0 : index
    %38 = vector.load %arg4[%c0_42, %c0_43] : memref<1152x128xbf16, #tpu.memory_space<vmem>>, vector<1152x128xbf16>
    %cst_44 = arith.constant dense<0.000000e+00> : vector<16x128xf32>
    %39 = tpu.matmul %37, %38, %cst_44 {dimension_numbers = #tpu.dot_dimension_numbers<[1], [0], [0], [1], [0, 0, 1, 1], [], []>} : vector<16x1152xbf16>, vector<1152x128xbf16>, vector<16x128xf32> -> vector<16x128xf32>
    %cst_45 = arith.constant dense<0.000000e+00> : vector<128xf32>
    %40 = vector.multi_reduction <add>, %39, %cst_45 [0] : vector<16x128xf32> to vector<128xf32>
    %41 = vector.shape_cast %40 : vector<128xf32> to vector<1x128xf32>
    %42 = arith.mulf %39, %39 : vector<16x128xf32>
    %cst_46 = arith.constant dense<0.000000e+00> : vector<128xf32>
    %43 = vector.multi_reduction <add>, %42, %cst_46 [0] : vector<16x128xf32> to vector<128xf32>
    %44 = vector.shape_cast %43 : vector<128xf32> to vector<1x128xf32>
    %45 = tpu.concatenate %41, %44 in 0 : vector<1x128xf32>, vector<1x128xf32> -> vector<2x128xf32>
    %c0_47 = arith.constant 0 : index
    %c0_48 = arith.constant 0 : index
    %c0_49 = arith.constant 0 : index
    %46 = vector.load %arg6[%c0_47, %c0_48, %c0_49] : memref<1x2x128xf32, #tpu.memory_space<vmem>>, vector<1x2x128xf32>
    %47 = vector.shape_cast %46 : vector<1x2x128xf32> to vector<2x128xf32>
    %48 = vector.shape_cast %45 : vector<2x128xf32> to vector<1x2x128xf32>
    tpu.vector_store %arg6[%c0_47, %c0_48, %c0_49], %48 {strides = array<i32>} : memref<1x2x128xf32, #tpu.memory_space<vmem>>, vector<1x2x128xf32>,
    %49 = arith.truncf %39 : vector<16x128xf32> to vector<16x128xbf16>
    %c0_50 = arith.constant 0 : index
    %c0_51 = arith.constant 0 : index
    %c0_52 = arith.constant 0 : index
    %50 = vector.load %arg5[%c0_50, %c0_51, %c0_52] : memref<1x16x128xbf16, #tpu.memory_space<vmem>>, vector<1x16x128xbf16>
    %51 = vector.shape_cast %50 : vector<1x16x128xbf16> to vector<16x128xbf16>
    %52 = vector.shape_cast %49 : vector<16x128xbf16> to vector<1x16x128xbf16>
    tpu.vector_store %arg5[%c0_50, %c0_51, %c0_52], %52 {strides = array<i32>} : memref<1x16x128xbf16, #tpu.memory_space<vmem>>, vector<1x16x128xbf16>,
    return
  }
  func.func @transform_0(%arg0: i32) -> (i32, i32, i32) {
    %c0_i32 = arith.constant 0 : i32
    %c0_i32_0 = arith.constant 0 : i32
    %c0_i32_1 = arith.constant 0 : i32
    return %arg0, %c0_i32, %c0_i32_0 : i32, i32, i32
  }
  func.func @transform_1(%arg0: i32) -> (i32, i32) {
    %c0_i32 = arith.constant 0 : i32
    %c0_i32_0 = arith.constant 0 : i32
    %c0_i32_1 = arith.constant 0 : i32
    return %c0_i32, %c0_i32_0 : i32, i32
  }
  func.func @transform_2(%arg0: i32) -> (i32, i32) {
    %c0_i32 = arith.constant 0 : i32
    %c0_i32_0 = arith.constant 0 : i32
    %c0_i32_1 = arith.constant 0 : i32
    return %c0_i32, %c0_i32_0 : i32, i32
  }
  func.func @transform_3(%arg0: i32) -> (i32, i32) {
    %c0_i32 = arith.constant 0 : i32
    %c0_i32_0 = arith.constant 0 : i32
    %c0_i32_1 = arith.constant 0 : i32
    return %c0_i32, %c0_i32_0 : i32, i32
  }
  func.func @transform_4(%arg0: i32) -> (i32, i32, i32) {
    %c0_i32 = arith.constant 0 : i32
    %c0_i32_0 = arith.constant 0 : i32
    %c0_i32_1 = arith.constant 0 : i32
    return %arg0, %c0_i32, %c0_i32_0 : i32, i32, i32
  }
  func.func @transform_5(%arg0: i32) -> (i32, i32, i32) {
    %c0_i32 = arith.constant 0 : i32
    %c0_i32_0 = arith.constant 0 : i32
    %c0_i32_1 = arith.constant 0 : i32
    return %arg0, %c0_i32, %c0_i32_0 : i32, i32, i32
  }
}

module attributes {stable_mosaic.version = 11 : i64} {
  func.func @bn_relu_kernel(%arg0: i32, %arg1: memref<1x16x128xbf16, #tpu.memory_space<vmem>>, %arg2: memref<1x128xf32, #tpu.memory_space<vmem>>, %arg3: memref<1x128xf32, #tpu.memory_space<vmem>>, %arg4: memref<1x16x128xf32, #tpu.memory_space<vmem>>) attributes {dimension_semantics = [#tpu.dimension_semantics<parallel>], iteration_bounds = array<i64: 2>, scalar_prefetch = 0 : i64, scratch_operands = 0 : i64, tpu.core_type = #tpu.core_type<tc>, window_params = [{transform_indices = @transform_0, window_bounds = array<i64: 1, 16, 128>}, {pipeline_mode = #tpu.pipeline_mode<synchronous>, transform_indices = @transform_1, window_bounds = array<i64: 1, 128>}, {pipeline_mode = #tpu.pipeline_mode<synchronous>, transform_indices = @transform_2, window_bounds = array<i64: 1, 128>}, {transform_indices = @transform_3, window_bounds = array<i64: 1, 16, 128>}]} {
    %c0 = arith.constant 0 : index
    %c0_0 = arith.constant 0 : index
    %c0_1 = arith.constant 0 : index
    %0 = vector.load %arg1[%c0, %c0_0, %c0_1] : memref<1x16x128xbf16, #tpu.memory_space<vmem>>, vector<1x16x128xbf16>
    %1 = vector.shape_cast %0 : vector<1x16x128xbf16> to vector<16x128xbf16>
    %2 = arith.extf %1 : vector<16x128xbf16> to vector<16x128xf32>
    %c0_2 = arith.constant 0 : index
    %c0_3 = arith.constant 0 : index
    %3 = vector.load %arg2[%c0_2, %c0_3] : memref<1x128xf32, #tpu.memory_space<vmem>>, vector<1x128xf32>
    %4 = vector.broadcast %3 : vector<1x128xf32> to vector<16x128xf32>
    %5 = arith.mulf %2, %4 : vector<16x128xf32>
    %c0_4 = arith.constant 0 : index
    %c0_5 = arith.constant 0 : index
    %6 = vector.load %arg3[%c0_4, %c0_5] : memref<1x128xf32, #tpu.memory_space<vmem>>, vector<1x128xf32>
    %7 = vector.broadcast %6 : vector<1x128xf32> to vector<16x128xf32>
    %8 = arith.addf %5, %7 : vector<16x128xf32>
    %cst = arith.constant 0.000000e+00 : f32
    %9 = vector.broadcast %cst : f32 to vector<16x128xf32>
    %10 = arith.maximumf %8, %9 : vector<16x128xf32>
    %c0_6 = arith.constant 0 : index
    %c0_7 = arith.constant 0 : index
    %c0_8 = arith.constant 0 : index
    %11 = vector.load %arg4[%c0_6, %c0_7, %c0_8] : memref<1x16x128xf32, #tpu.memory_space<vmem>>, vector<1x16x128xf32>
    %12 = vector.shape_cast %11 : vector<1x16x128xf32> to vector<16x128xf32>
    %13 = vector.shape_cast %10 : vector<16x128xf32> to vector<1x16x128xf32>
    tpu.vector_store %arg4[%c0_6, %c0_7, %c0_8], %13 {strides = array<i32>} : memref<1x16x128xf32, #tpu.memory_space<vmem>>, vector<1x16x128xf32>,
    return
  }
  func.func @transform_0(%arg0: i32) -> (i32, i32, i32) {
    %c0_i32 = arith.constant 0 : i32
    %c0_i32_0 = arith.constant 0 : i32
    %c0_i32_1 = arith.constant 0 : i32
    return %arg0, %c0_i32, %c0_i32_0 : i32, i32, i32
  }
  func.func @transform_1(%arg0: i32) -> (i32, i32) {
    %c0_i32 = arith.constant 0 : i32
    %c0_i32_0 = arith.constant 0 : i32
    %c0_i32_1 = arith.constant 0 : i32
    return %c0_i32, %c0_i32_0 : i32, i32
  }
  func.func @transform_2(%arg0: i32) -> (i32, i32) {
    %c0_i32 = arith.constant 0 : i32
    %c0_i32_0 = arith.constant 0 : i32
    %c0_i32_1 = arith.constant 0 : i32
    return %c0_i32, %c0_i32_0 : i32, i32
  }
  func.func @transform_3(%arg0: i32) -> (i32, i32, i32) {
    %c0_i32 = arith.constant 0 : i32
    %c0_i32_0 = arith.constant 0 : i32
    %c0_i32_1 = arith.constant 0 : i32
    return %arg0, %c0_i32, %c0_i32_0 : i32, i32, i32
  }
}

</mosaic_0001>

<bundles_post_ra>
// kernel: tile.28
= control target key start
LH: loop header
LB: loop body
LE: loop exit
PB: predicated region body
PF: predicated region fallthrough
CT: control target
= control target key end

     0   :  { %s28_s0 = inlined_call_operand.vmem [shape: f32[8], index: 0, kind: input, shape index: {}]   ;;  %s29_s1 = inlined_call_operand.vmem [shape: f32[16,8], index: 1, kind: output, shape index: {}]  }
   0x1   :  { %v4_v0 = vld [vmem:[%s28_s0] ss:$0 sm:$0xff] }
   0x2   :  { %5 = vst [vmem:[%s29_s1] sm:$0xff] %v4_v0  ;;  %8 = vst [vmem:[%s29_s1 + $0x8] sm:$0xff] %v4_v0 }

// kernel: tile.29
= control target key start
LH: loop header
LB: loop body
LE: loop exit
PB: predicated region body
PF: predicated region fallthrough
CT: control target
= control target key end

     0   :  { %s131_s10 = smov 120   ;;  %s132_s11 = smov 104   ;;  %vm3_vm0 = vcmask 64512   ;;  %vm9_vm1 = vcmask 1048512   ;;  %vm15_vm2 = vcmask 982912   ;;  %vm21_vm3 = vcmask 917312   ;;  %s207_s0 = inlined_call_operand.vmem [shape: f32[16,8], index: 0, kind: input, shape index: {}]   ;;  %s208_s1 = inlined_call_operand.vmem [shape: f32[1,128], index: 1, kind: output, shape index: {}]  }
   0x1   :  { %v101_v0 = vld [vmem:[%s207_s0 + $0xf] sm:$0x1]   ;;  %v103_v1 = vld [vmem:[%s207_s0 + $0xd] sm:$0x1]   ;;  %v102_v2 = vld [vmem:[%s207_s0 + $0xe] sm:$0x1]  }
   0x2   :  { %7 = vrot.lane.b32.xlu0 %v101_v0, %s131_s10  ;;  %19 = vrot.lane.b32.xlu1 %v103_v1, %s132_s11  ;;  %v104_v3 = vld [vmem:[%s207_s0 + $0xc] sm:$0x1]   ;;  %s133_s16 = smov 112   ;;  %s134_s17 = smov 96   ;;  %v105_v4 = vld [vmem:[%s207_s0 + $0xb] sm:$0x1]  }
   0x3   :  { %v106_v5 = vld [vmem:[%s207_s0 + $0xa] sm:$0x1]   ;;  %v2_v6 = vld [vmem:[%s207_s0] sm:$0x1]   ;;  %s135_s24 = smov 88   ;;  %s136_s25 = smov 80  }
   0x4   :  { %4 = vst.msk [vmem:[#allocation0] sm:$0x1] %vm3_vm0, %v2_v6   ;;  %v107_v7 = vld [vmem:[%s207_s0 + $0x9] sm:$0x1]   ;;  %v108_v8 = vld [vmem:[%s207_s0 + $0x8] sm:$0x1]  }
   0x5   :  { %s137_s30 = smov 72   ;;  %s138_s2 = smov 64   ;;  %v109_v9 = vld [vmem:[%s207_s0 + $0x7] sm:$0x1]   ;;  %v110_v10 = vld [vmem:[%s207_s0 + $0x6] sm:$0x1]  }
   0x6   :  { %13 = vrot.lane.b32.xlu0 %v102_v2, %s133_s16  ;;  %25 = vrot.lane.b32.xlu1 %v104_v3, %s134_s17  ;;  %s139_s7 = smov 56   ;;  %s140_s8 = smov 48   ;;  %v111_v11 = vld [vmem:[%s207_s0 + $0x5] sm:$0x1]   ;;  %v112_v12 = vld [vmem:[%s207_s0 + $0x4] sm:$0x1]  }
   0x7   :  { %s141_s13 = smov 40   ;;  %s142_s14 = smov 32   ;;  %v113_v13 = vld [vmem:[%s207_s0 + $0x3] sm:$0x1]   ;;  %v114_v14 = vld [vmem:[%s207_s0 + $0x2] sm:$0x1]  }
   0x8   :  { %s143_s19 = smov 24   ;;  %s144_s20 = smov 16   ;;  %v115_v15 = vld [vmem:[%s207_s0 + $0x1] sm:$0x1]   ;;  %vm27_vm4 = vcmask 851712   ;;  %vm33_vm5 = vcmask 786112  }
   0x9   :  { %s145_s0 = smov 8   ;;  %vm39_vm6 = vcmask 720512   ;;  %vm45_vm7 = vcmask 654912   ;;  %vm51_vm8 = vcmask 589312   ;;  %vm57_vm9 = vcmask 523712  }
   0xa   :  { %31 = vrot.lane.b32.xlu0 %v105_v4, %s135_s24  ;;  %37 = vrot.lane.b32.xlu1 %v106_v5, %s136_s25  ;;  %vm63_vm10 = vcmask 458112   ;;  %vm69_vm11 = vcmask 392512   ;;  %vm75_vm12 = vcmask 326912   ;;  %vm81_vm13 = vcmask 261312  }
   0xb   :  { %vm87_vm14 = vcmask 195712   ;;  %vm93_vm15 = vcmask 130112  }
   0xe   :  { %43 = vrot.lane.b32.xlu0 %v107_v7, %s137_s30  ;;  %49 = vrot.lane.b32.xlu1 %v108_v8, %s138_s2 }
  0x12   :  { %55 = vrot.lane.b32.xlu0 %v109_v9, %s139_s7  ;;  %61 = vrot.lane.b32.xlu1 %v110_v10, %s140_s8 }
  0x16   :  { %67 = vrot.lane.b32.xlu0 %v111_v11, %s141_s13  ;;  %73 = vrot.lane.b32.xlu1 %v112_v12, %s142_s14 }
  0x1a   :  { %79 = vrot.lane.b32.xlu0 %v113_v13, %s143_s19  ;;  %85 = vrot.lane.b32.xlu1 %v114_v14, %s144_s20 }
  0x1e   :  { %91 = vrot.lane.b32.xlu0 %v115_v15, %s145_s0 }
  0x74   :  { %v8_v16 = vpop.permute.xlu0 %7   ;;  %v20_v17 = vpop.permute.xlu1 %19  }
  0x75   :  { %10 = vst.msk [vmem:[#allocation0] sm:$0x1] %vm9_vm1, %v8_v16  }
  0x78   :  { %v14_v18 = vpop.permute.xlu0 %13   ;;  %v26_v19 = vpop.permute.xlu1 %25  }
  0x79   :  { %16 = vst.msk [vmem:[#allocation0] sm:$0x1] %vm15_vm2, %v14_v18  }
  0x7a   :  { %22 = vst.msk [vmem:[#allocation0] sm:$0x1] %vm21_vm3, %v20_v17  }
  0x7b   :  { %28 = vst.msk [vmem:[#allocation0] sm:$0x1] %vm27_vm4, %v26_v19  }
  0x7c   :  { %v32_v20 = vpop.permute.xlu0 %31   ;;  %v38_v21 = vpop.permute.xlu1 %37  }
  0x7d   :  { %34 = vst.msk [vmem:[#allocation0] sm:$0x1] %vm33_vm5, %v32_v20  }
  0x7e   :  { %40 = vst.msk [vmem:[#allocation0] sm:$0x1] %vm39_vm6, %v38_v21  }
  0x80   :  { %v44_v22 = vpop.permute.xlu0 %43   ;;  %v50_v23 = vpop.permute.xlu1 %49  }
  0x81   :  { %46 = vst.msk [vmem:[#allocation0] sm:$0x1] %vm45_vm7, %v44_v22  }
  0x82   :  { %52 = vst.msk [vmem:[#allocation0] sm:$0x1] %vm51_vm8, %v50_v23  }
  0x84   :  { %v56_v24 = vpop.permute.xlu0 %55   ;;  %v62_v25 = vpop.permute.xlu1 %61  }
  0x85   :  { %58 = vst.msk [vmem:[#allocation0] sm:$0x1] %vm57_vm9, %v56_v24  }
  0x86   :  { %64 = vst.msk [vmem:[#allocation0] sm:$0x1] %vm63_vm10, %v62_v25  }
  0x88   :  { %v68_v26 = vpop.permute.xlu0 %67   ;;  %v74_v27 = vpop.permute.xlu1 %73  }
  0x89   :  { %70 = vst.msk [vmem:[#allocation0] sm:$0x1] %vm69_vm11, %v68_v26  }
  0x8a   :  { %76 = vst.msk [vmem:[#allocation0] sm:$0x1] %vm75_vm12, %v74_v27  }
  0x8c   :  { %v80_v28 = vpop.permute.xlu0 %79   ;;  %v86_v29 = vpop.permute.xlu1 %85  }
  0x8d   :  { %82 = vst.msk [vmem:[#allocation0] sm:$0x1] %vm81_vm13, %v80_v28  }
  0x8e   :  { %88 = vst.msk [vmem:[#allocation0] sm:$0x1] %vm87_vm14, %v86_v29  }
  0x90   :  { %v92_v30 = vpop.permute.xlu0 %91  }
  0x91   :  { %94 = vst.msk [vmem:[#allocation0] sm:$0x1] %vm93_vm15, %v92_v30  }
  0x98   :  { %v98_v31 = vld [vmem:[#allocation0] sm:$0x1] }
  0x99   :  { %100 = vst [vmem:[%s208_s1] sm:$0x1] %v98_v31 }

// kernel: double_conv.3
= control target key start
LH: loop header
LB: loop body
LE: loop exit
PB: predicated region body
PF: predicated region fallthrough
CT: control target
= control target key end

     0   :  { %s1199_s12 = smov 0   ;;  %s1354_s0 = inlined_call_operand.vmem [shape: f32[2,16,64], index: 0, kind: input, shape index: {}]   ;;  %s1355_s1 = inlined_call_operand.vmem [shape: bf16[576,128], index: 1, kind: input, shape index: {}]   ;;  %s1356_s2 = inlined_call_operand.vmem [shape: bf16[2,16,128], index: 2, kind: output, shape index: {0}]   ;;  %s1357_s3 = inlined_call_operand.vmem [shape: f32[2,2,128], index: 3, kind: output, shape index: {1}]  }
   0x1 LB: > { %s954_s13 = sadd.s32 4294967295, %s1168_s12   ;;  %p958_p0 = scmp.ge.s32.totalorder %s1168_s12, 1  ;;  %s1168_s12 = sphi %s1199_s12, %s14_s12  }
   0x2   : > { %p140_p1 = scmp.lt.s32.totalorder %s1168_s12, 3 }
   0x4   : > { %p141_p2 = pnand %p958_p0, %p140_p1 }
   0x5   : > { %p168_p3 = scmp.lt.s32.totalorder (!%p141_p2), %s954_s13, 1  ;;  %vm187_vm0 = vsmask.f32 (!%p141_p2), 256  ;;  %vm186_vm1 = vcmask (!%p141_p2), 581632   ;;  %v189_v0 = vld [vmem:[#allocation2] sm:$0x1] (!%p141_p2) }
   0x6   : > { %144 = sbr.rel (%p141_p2) target bundleno = 534 (0x216), region = 28  ;;  %vm192_vm2 = vsmask.f32 (!%p141_p2), 7938  ;;  %vm188_vm3 = vmand (!%p141_p2), %vm186_vm1, %vm187_vm0  ;;  %v194_v1 = vld [vmem:[#allocation2 + $0x8] sm:$0x1] (!%p141_p2)  ;;  %vm197_vm4 = vcmask (!%p141_p2), 27648  }
   0x7   : > { %v190_v2 = vsel (!%p141_p2), %vm188_vm3, 0, %v189_v0  ;;  %vm193_vm5 = vmand (!%p141_p2), %vm186_vm1, %vm192_vm2  ;;  %vm200_vm6 = vcmask (!%p141_p2), 24576   ;;  %vm202_vm7 = vcmask (!%p141_p2), 585248   ;;  %v1170_v3 = vmov (!%p141_p2), 0   ;;  %s1171_s18 = smov (!%p141_p2), 4   ;;  %v1123_v20 = vld [vmem:[%s1355_s1 + $0x40] sm:$0xff] (!%p141_p2)  }
   0x8   : > { %199 = vst.msk [vmem:[#allocation2 + $0x4] sm:$0xf] (!%p141_p2), %vm197_vm4, %v1170_v3  ;;  %191 = vst [vmem:[#allocation2] sm:$0x1] (!%p141_p2), %v190_v2  ;;  %v195_v4 = vsel (!%p141_p2), %vm193_vm5, 0, %v194_v1  ;;  %vm205_vm8 = vcmask (!%p141_p2), 582176   ;;  %1033 = vmatprep.subr.bf16.mxu0 (!%p141_p2), %v1123_v20 }
   0x9   : > { %204 = vst.msk [vmem:[#allocation2 + $0x4] sm:$0xf] (!%p141_p2), %vm202_vm7, %v1170_v3  ;;  %196 = vst [vmem:[#allocation2 + $0x8] sm:$0x1] (!%p141_p2), %v195_v4  ;;  %vm212_vm9 = vsmask.f32 (!%p141_p2), 4368 }
   0xa   : > { %198 = vst.msk [vmem:[#allocation2] sm:$0xf] (!%p141_p2), %vm197_vm4, %v1170_v3  ;;  %vm213_vm10 = vmor (!%p141_p2), %vm187_vm0, %vm212_vm9  ;;  %v1124_v21 = vld [vmem:[%s1355_s1] sm:$0xff] (!%p141_p2)   ;;  %v1125_v22 = vld [vmem:[%s1355_s1 + $0x48] sm:$0xff] (!%p141_p2)   ;;  %vm240_vm11 = vcmask (!%p141_p2), 551968   ;;  %vm247_vm12 = vcmask (!%p141_p2), 548896  }
   0xb   : > { %201 = vst.msk [vmem:[#allocation2 + $0x8] sm:$0x1] (!%p141_p2), %vm200_vm6, %v1170_v3  ;;  %v1128_v23 = vld [vmem:[%s1355_s1 + $0xc0] sm:$0xff] (!%p141_p2)   ;;  %1034 = vmatpush3.bf16.msra.mxu0 (!%p141_p2), %v1124_v21  ;;  %v1126_v25 = vld [vmem:[%s1355_s1 + $0x8] sm:$0xff] (!%p141_p2)   ;;  %v1127_v26 = vld [vmem:[%s1355_s1 + $0x50] sm:$0xff] (!%p141_p2)   ;;  %vm378_vm15 = vcmask (!%p141_p2), 1046528  }
   0xc   : > { %203 = vst.msk [vmem:[#allocation2] sm:$0xf] (!%p141_p2), %vm202_vm7, %v1170_v3  ;;  %v1130_v24 = vld [vmem:[%s1355_s1 + $0x80] sm:$0xff] (!%p141_p2)   ;;  %1055 = vmatprep.subr.bf16.mxu1 (!%p141_p2), %v1128_v23  ;;  %v1132_v27 = vld [vmem:[%s1355_s1 + $0xc8] sm:$0xff] (!%p141_p2)   ;;  %1035 = vmatprep.subr.bf16.mxu0 (!%p141_p2), %v1125_v22  ;;  %v1136_v29 = vld [vmem:[%s1355_s1 + $0xd0] sm:$0xff] (!%p141_p2)   ;;  %s1172_s9 = smov (!%p141_p2), 120  }
   0xd   : > { %s1359_s13 = smov (!%p168_p3, %s954_s13), 1  ;;  %206 = vst.msk [vmem:[#allocation2 + $0x8] sm:$0x1] %vm205_vm8, %v1170_v3  ;;  %1056 = vmatpush3.bf16.msra.mxu1 %v1130_v24  ;;  %v1134_v28 = vld [vmem:[%s1355_s1 + $0x88] sm:$0xff]   ;;  %v1129_v30 = vld [vmem:[%s1355_s1 + $0x10] sm:$0xff]   ;;  %v1131_v31 = vld [vmem:[%s1355_s1 + $0x58] sm:$0xff]  }
   0xe   : > { %s1022_s14 = sshll.u32 %s1359_s13, 4  ;;  %1057 = vmatprep.subr.bf16.mxu1 %v1132_v27  ;;  %v1133_v32 = vld [vmem:[%s1355_s1 + $0x18] sm:$0xff]   ;;  %v1135_v33 = vld [vmem:[%s1355_s1 + $0x60] sm:$0xff]   ;;  %vm241_vm13 = vmand %vm240_vm11, %vm192_vm2  ;;  %s1173_s10 = smov 60   ;;  %vm260_vm1 = vcmask 523264   ;;  %vm272_vm2 = vcmask 1048064  }
   0xf   : > { %s172_s17 = scalar_lea.vmem %s1354_s0, %s1022_s14  ;;  %1036 = vmatpush3.bf16.msra.mxu0 %v1126_v25  ;;  %vm248_vm14 = vmand %vm247_vm12, %vm187_vm0  ;;  %v1137_v40 = vld [vmem:[%s1355_s1 + $0x20] sm:$0xff]   ;;  %v1138_v41 = vld [vmem:[%s1355_s1 + $0x90] sm:$0xff]   ;;  %vm296_vm0 = vsmask.f32 7424  ;;  %s1174_s11 = smov 64   ;;  %vm1178_vm3 = vmmov 0  }
  0x10   : > { %v183_v5 = vld [vmem:[%s172_s17] sm:$0xff]  ;;  %v184_v6 = vld [vmem:[%s172_s17 + $0x8] sm:$0xff]  ;;  %1037 = vmatprep.subr.bf16.mxu0 %v1127_v26  ;;  %v1140_v43 = vld [vmem:[%s1355_s1 + $0xd8] sm:$0xff]   ;;  %s1176_s4 = smov 56   ;;  %s1023_s21 = sshll.u32 %s1359_s13, 3  ;;  %vm855_vm4 = vcmask 1040384  }
  0x11   : > { %v1024_v7 = vpack.c.bf16 %v183_v5, %v183_v5  ;;  %v1025_v8 = vpack.c.bf16 %v184_v6, %v184_v6  ;;  %1058 = vmatpush3.bf16.msra.mxu1 %v1134_v28  ;;  %v1139_v42 = vld [vmem:[%s1355_s1 + $0x68] sm:$0xff]   ;;  %v1143_v46 = vld [vmem:[%s1355_s1 + $0x98] sm:$0xff]   ;;  %v1144_v48 = vld [vmem:[%s1355_s1 + $0x70] sm:$0xff]   ;;  %s177_s24 = scalar_lea.vmem %s1356_s2, %s1023_s21  ;;  %s963_s25 = sshll.u32 %s1359_s13, 1 }
  0x12   : > { %1059 = vmatprep.subr.bf16.mxu1 %v1136_v29  ;;  %v1142_v45 = vld [vmem:[%s1355_s1 + $0x28] sm:$0xff]   ;;  %v1148_v24 = vld [vmem:[%s1355_s1 + $0x30] sm:$0xff]   ;;  %v1149_v27 = vld [vmem:[%s1355_s1 + $0xa0] sm:$0xff]   ;;  %s181_s28 = scalar_lea.vmem %s1357_s3, %s963_s25 }
  0x13   : > { %v215_v9 = vshrl.u32 %v1024_v7, 16  ;;  %v218_v10 = vshll.u32 %v1024_v7, 16  ;;  %v223_v11 = vshrl.u32 %v1025_v8, 16  ;;  %v226_v12 = vshll.u32 %v1025_v8, 16  ;;  %1038 = vmatpush3.bf16.msra.mxu0 %v1129_v30  ;;  %v242_v34 = vld [vmem:[#allocation2] sm:$0xf] }
  0x14   : > { %1039 = vmatprep.subr.bf16.mxu0 %v1131_v31  ;;  %v249_v35 = vld [vmem:[#allocation2 + $0x8] sm:$0x1]  ;;  %v1150_v28 = vld [vmem:[%s1355_s1 + $0x78] sm:$0xff]  }
  0x15   : > { %v217_v13 = vrot.slane %v215_v9, 7  ;;  %v225_v14 = vrot.slane %v223_v11, 7  ;;  %1060 = vmatpush3.bf16.msra.mxu1 %v1138_v41  ;;  %v1151_v31 = vld [vmem:[%s1355_s1 + $0xe8] sm:$0xff]  }
  0x16   : > { %1061 = vmatprep.subr.bf16.mxu1 %v1140_v43 }
  0x17   : > { %v220_v15 = vor.u32 %v218_v10, %v217_v13  ;;  %v221_v16 = vrot.slane %v217_v13, 4  ;;  %v230_v17 = vrot.slane %v225_v14, 4  ;;  %v228_v18 = vor.u32 %v226_v12, %v225_v14  ;;  %1040 = vmatpush3.bf16.msra.mxu0 %v1133_v32  ;;  %v1152_v32 = vld [vmem:[%s1355_s1 + $0x38] sm:$0xff]  }
  0x18   : > { %1041 = vmatprep.subr.bf16.mxu0 %v1135_v33  ;;  %v1153_v33 = vld [vmem:[%s1355_s1 + $0xa8] sm:$0xff]  }
  0x19   : > { %231 = vrot.lane.b32.xlu0 %v220_v15, %s1171_s18  ;;  %235 = vrot.lane.b32.xlu1 %v230_v17, %s1171_s18  ;;  %v229_v19 = vsel %vm213_vm10, %v221_v16, %v228_v18  ;;  %v1145_v17 = vld [vmem:[%s1355_s1 + $0xe0] sm:$0xff]  }
  0x1a   : > { %1062 = vmatpush3.bf16.msra.mxu1 %v1143_v46 }
  0x1b   : > { %1042 = vmatpush3.bf16.msra.mxu0 %v1137_v40  ;;  %1063 = vmatprep.subr.bf16.mxu1 %v1145_v17  ;;  %v1158_v40 = vld [vmem:[%s1355_s1 + $0xb8] sm:$0xff]  }
  0x1c   : > { %1043 = vmatprep.subr.bf16.mxu0 %v1139_v42 }
  0x1d   : > { %233 = vrot.lane.b32.xlu0 %v229_v19, %s1171_s18  ;;  %s1175_s18 = smov 124  }
  0x1e   : > { %1064 = vmatpush3.bf16.msra.mxu1 %v1149_v27 }
  0x1f   : > { %1044 = vmatpush3.bf16.msra.mxu0 %v1142_v45  ;;  %1065 = vmatprep.subr.bf16.mxu1 %v1151_v31 }
  0x20   : > { %1045 = vmatprep.subr.bf16.mxu0 %v1144_v48 }
  0x22   : > { %1066 = vmatpush3.bf16.msra.mxu1 %v1153_v33 }
  0x23   : > { %1046 = vmatpush3.bf16.msra.mxu0 %v1148_v24 }
  0x24   : > { %1047 = vmatprep.subr.bf16.mxu0 %v1150_v28 }
  0x27   : > { %1048 = vmatpush3.bf16.msra.mxu0 %v1152_v32 }
  0x8b   : > { %v232_v36 = vpop.permute.xlu0 %231  ;;  %v236_v37 = vpop.permute.xlu1 %235 }
  0x8c   : > { %v243_v38 = vsel %vm241_vm13, %v232_v36, %v242_v34  ;;  %v250_v39 = vsel %vm248_vm14, %v236_v37, %v249_v35  ;;  %v1154_v36 = vld [vmem:[%s1355_s1 + $0xf0] sm:$0xff]   ;;  %v1177_v37 = vmov 0.0  }
  0x8d   : > { %244 = vst [vmem:[#allocation2] sm:$0xf] %v243_v38  ;;  %251 = vst [vmem:[#allocation2 + $0x8] sm:$0x1] %v250_v39  ;;  %1082 = vmatprep.subr.bf16.mxu0 %v1177_v37  ;;  %v1155_v38 = vld [vmem:[%s1355_s1 + $0xb0] sm:$0xff]   ;;  %1067 = vmatprep.subr.bf16.mxu1 %v1154_v36  ;;  %v1157_v39 = vld [vmem:[%s1355_s1 + $0xf8] sm:$0xff]  }
  0x8e   : > { %1068 = vmatpush3.bf16.msra.mxu1 %v1155_v38 }
  0x8f   : > { %v234_v44 = vpop.permute.xlu0 %233  ;;  %1069 = vmatprep.subr.bf16.mxu1 %v1157_v39 }
  0x90   : > { %246 = vst.msk [vmem:[#allocation2 + $0x4] sm:$0xf] %vm240_vm11, %v234_v44 }
  0x92   : > { %1070 = vmatpush3.bf16.msra.mxu1 %v1158_v40 }
  0x94   : > { %v1114_v47 = vld [vmem:[#allocation2 + $0x8] ss:$0 sps:$4 sm:$0x11]  }
  0x95   : > { %v305_v50 = vshll.u32 %v1114_v47, 16  ;;  %v1116_v58 = vld [vmem:[#allocation2 + $0x8] ss:$0 sps:$4 sm:$0x11]   ;;  %v1156_v47 = vld [vmem:[%s1355_s1 + $0x100] sm:$0xff]  }
  0x96   : > { %v396_v63 = vrot.slane %v1116_v58, 1  ;;  %v1118_v0 = vld [vmem:[#allocation2 + $0x8] ss:$0 sps:$4 sm:$0x11]  }
  0x97   : > { %v1111_v49 = vld [vmem:[#allocation2] sm:$0xff]   ;;  %v307_v57 = vrot.slane %v305_v50, 1  ;;  %v332_v4 = vshll.u32 %v1118_v0, 16  ;;  %v1120_v7 = vld [vmem:[#allocation2 + $0x8] ss:$0 sps:$4 sm:$0x11]  }
  0x98   : > { %v1113_v51 = vld [vmem:[#allocation2] sm:$0xff]   ;;  %281 = vrot.lane.b32.xlu1 %v1111_v49, %s1172_s9  ;;  %v414_v12 = vrot.slane %v1120_v7, 1  ;;  %v1122_v13 = vld [vmem:[#allocation2 + $0x8] ss:$0 sps:$4 sm:$0x11]  }
  0x99   : > { %v1112_v52 = vld [vmem:[#allocation2] sm:$0xff]   ;;  %v298_v55 = vshrl.u32 %v1113_v51, 16  ;;  %v300_v56 = vshll.u32 %v1113_v51, 16  ;;  %v334_v10 = vrot.slane %v332_v4, 1  ;;  %v359_v19 = vshll.u32 %v1122_v13, 16 }
  0x9a   : > { %v1115_v53 = vld [vmem:[#allocation2] sm:$0xfe]   ;;  %v1147_v23 = vld [vmem:[#allocation2 + $0x8] ss:$0 sps:$4 sm:$0x11]  }
  0x9b   : > { %v1117_v54 = vld [vmem:[#allocation2] sm:$0xff]   ;;  %v395_v59 = vrot.slane %v1115_v53, 1  ;;  %v302_v62 = vrot.slane %v300_v56, 1  ;;  %v361_v26 = vrot.slane %v359_v19, 1  ;;  %v380_v30 = vrot.slane %v1147_v23, 1  ;;  %v1160_v53 = vld [vmem:[%s1355_s1 + $0x110] sm:$0xff]  }
  0x9c   : > { %v325_v60 = vshrl.u32 %v1117_v54, 16  ;;  %v1121_v61 = vld [vmem:[#allocation2] sm:$0xff]   ;;  %v327_v1 = vshll.u32 %v1117_v54, 16  ;;  %269 = vrot.lane.b32.xlu1 %v1112_v52, %s1173_s10  ;;  %v1159_v52 = vld [vmem:[%s1355_s1 + $0x108] sm:$0xff]  }
  0x9d   : > { %v303_v2 = vor.u32 %v302_v62, %v298_v55  ;;  %v1119_v5 = vld [vmem:[#allocation2] sm:$0xfe]   ;;  %v397_v6 = vsel %vm378_vm15, %v395_v59, %v396_v63  ;;  %v354_v14 = vshll.u32 %v1121_v61, 16  ;;  %v352_v16 = vshrl.u32 %v1121_v61, 16  ;;  %v1161_v55 = vld [vmem:[%s1355_s1 + $0x118] sm:$0xff]  }
  0x9e   : > { %v329_v3 = vrot.slane %v327_v1, 1  ;;  %v413_v11 = vrot.slane %v1119_v5, 1  ;;  %v1141_v15 = vld [vmem:[#allocation2] sm:$0xff]  }
  0x9f   : > { %v308_v8 = vsel %vm296_vm0, %v303_v2, %v307_v57  ;;  %v356_v18 = vrot.slane %v354_v14, 1  ;;  %261 = vst.msk [vmem:[#allocation3] sm:$0xff] %vm260_vm1, %v1141_v15  ;;  %v1146_v22 = vld [vmem:[#allocation2] sm:$0xfe]  }
  0xa0   : > { %v330_v9 = vor.u32 %v329_v3, %v325_v60  ;;  %309 = vrot.lane.b32.xlu0 %v308_v8, %s1174_s11  ;;  %398 = vrot.lane.b32.xlu1 %v397_v6, %s1173_s10  ;;  %v415_v21 = vsel %vm378_vm15, %v413_v11, %v414_v12  ;;  %v379_v29 = vrot.slane %v1146_v22, 1 }
  0xa1   : > { %v357_v25 = vor.u32 %v356_v18, %v352_v16 }
  0xa2   : > { %v335_v20 = vsel %vm296_vm0, %v330_v9, %v334_v10  ;;  %v381_v35 = vsel %vm378_vm15, %v379_v29, %v380_v30 }
  0xa3   : > { %v362_v34 = vsel %vm296_vm0, %v357_v25, %v361_v26  ;;  %383 = vst.msk [vmem:[#allocation3 + $0x18] sm:$0xff] %vm260_vm1, %v381_v35 }
  0xa4   : > { %336 = vrot.lane.b32.xlu0 %v335_v20, %s1175_s18  ;;  %416 = vrot.lane.b32.xlu1 %v415_v21, %s1172_s9 }
  0xa8   : > { %363 = vrot.lane.b32.xlu0 %v362_v34, %s1176_s4 }
 0x10a   : > { %v282_v41 = vpop.permute.xlu1 %281 }
 0x10b   : > { %284 = vst.msk [vmem:[#allocation3 + $0x8] sm:$0xff] %vm260_vm1, %v282_v41 }
 0x10e   : > { %v270_v42 = vpop.permute.xlu1 %269 }
 0x10f   : > { %273 = vst.msk [vmem:[#allocation3] sm:$0xff] %vm272_vm2, %v270_v42 }
 0x112   : > { %v310_v43 = vpop.permute.xlu0 %309  ;;  %v399_v44 = vpop.permute.xlu1 %398 }
 0x113   : > { %312 = vst.msk [vmem:[#allocation3 + $0x8] sm:$0xff] %vm272_vm2, %v310_v43  ;;  %401 = vst.msk [vmem:[#allocation3 + $0x18] sm:$0xff] %vm272_vm2, %v399_v44 }
 0x116   : > { %v337_v45 = vpop.permute.xlu0 %336  ;;  %v417_v46 = vpop.permute.xlu1 %416  ;;  %v420_v51 = vld [vmem:[#allocation3] sm:$0xff] }
 0x117   : > { %339 = vst.msk [vmem:[#allocation3 + $0x10] sm:$0xff] %vm260_vm1, %v337_v45  ;;  %419 = vst.msk [vmem:[#allocation3 + $0x20] sm:$0xff] %vm260_vm1, %v417_v46 }
 0x11a   : > { %v364_v48 = vpop.permute.xlu0 %363  ;;  %v421_v49 = vld [vmem:[#allocation3 + $0x8] sm:$0xff]  ;;  %v423_v50 = vld [vmem:[#allocation3 + $0x18] sm:$0xff] }
 0x11b   : > { %366 = vst.msk [vmem:[#allocation3 + $0x10] sm:$0xff] %vm272_vm2, %v364_v48  ;;  %748 = vmatprep.mubr.bf16.mxu0 %v421_v49  ;;  %789 = vmatprep.mubr.bf16.mxu1 %v423_v50 }
 0x11c   : > { %749 = vmatmul.mubr.bf16.vlgmr.msra.gmra.mrb[0].mxu0 %v420_v51 }
 0x11d   : > { %1083 = vmatpush3.bf16.msra.mxu0 %v1156_v47  ;;  %1090 = vmatprep.mubr.msk.bf16.mxu0 %vm1178_vm3, %v1177_v37 }
 0x11e   : > { %1084 = vmatprep.subr.bf16.mxu0 %v1177_v37  ;;  %v424_v56 = vld [vmem:[#allocation3 + $0x20] sm:$0xff] }
 0x121   : > { %1085 = vmatpush3.bf16.msra.mxu0 %v1159_v52 }
 0x122   : > { %v422_v54 = vld [vmem:[#allocation3 + $0x10] sm:$0xff]  ;;  %1086 = vmatprep.subr.bf16.mxu0 %v1177_v37 }
 0x123   : > { %790 = vmatmul.mubr.bf16.vlgmr.msra.gmra.mrb[0].mxu1 %v422_v54 }
 0x125   : > { %1087 = vmatpush3.bf16.msra.mxu0 %v1160_v53 }
 0x126   : > { %1088 = vmatprep.subr.bf16.mxu0 %v1177_v37 }
 0x129   : > { %1089 = vmatpush3.bf16.msra.mxu0 %v1161_v55 }
 0x12c   : > { %1091 = vmatmul.mubr.msk.bf16.vlgmr.msra.gmra.mrb[4].mxu0 %vm260_vm1, %v424_v56 }
 0x1ef   : > { %v1049_v57 = vpop.f32.mrb[0].mxu0 }
 0x1f0   : > { %v1050_v58 = vpop.f32.mrb[1].mxu0 }
 0x1f1   : > { %v1051_v59 = vadd.f32 %v1050_v58, %v1049_v57  ;;  %v1052_v60 = vpop.f32.mrb[2].mxu0 }
 0x1f2   : > { %v1053_v61 = vpop.f32.mrb[3].mxu0 }
 0x1f3   : > { %v1054_v62 = vadd.f32 %v1053_v61, %v1052_v60 }
 0x1f6   : > { %v1071_v63 = vpop.f32.mrb[0].mxu1 }
 0x1f7   : > { %v1072_v0 = vpop.f32.mrb[1].mxu1 }
 0x1f8   : > { %v1073_v1 = vadd.f32 %v1072_v0, %v1071_v63  ;;  %v1074_v2 = vpop.f32.mrb[2].mxu1 }
 0x1f9   : > { %v1075_v3 = vpop.f32.mrb[3].mxu1 }
 0x1fa   : > { %v1076_v4 = vadd.f32 %v1075_v3, %v1074_v2  ;;  %v792_v5 = vadd.f32 %v1073_v1, %v1051_v59 }
 0x1fc   : > { %v795_v6 = vadd.f32 %v1076_v4, %v1054_v62 }
 0x1ff   : > { %v832_v7 = vpop.f32.mrb[4].mxu0 }
 0x200   : > { %v833_v8 = vadd.f32 %v832_v7, %v792_v5  ;;  %v1092_v9 = vpop.f32.mrb[5].mxu0 }
 0x201   : > { %v835_v10 = vpop.f32.mrb[6].mxu0 }
 0x202   : > { %v836_v11 = vadd.f32 %v835_v10, %v795_v6  ;;  %v1093_v12 = vpop.f32.mrb[7].mxu0  ;;  %v846_v13 = vmul.f32 %v833_v8, %v833_v8 }
 0x204   : > { %v839_v14 = vadd.f32 %v836_v11, %v833_v8  ;;  %v847_v15 = vmul.f32 %v836_v11, %v836_v11  ;;  %v1031_v16 = vpack.c.bf16 %v836_v11, %v833_v8 }
 0x206   : > { %v840_v17 = vrot.slane %v839_v14, 4  ;;  %v848_v18 = vadd.f32 %v847_v15, %v846_v13  ;;  %1032 = vst [vmem:[%s177_s24] sm:$0xff] %v1031_v16  }
 0x208   : > { %v841_v19 = vadd.f32 %v840_v17, %v839_v14  ;;  %v849_v20 = vrot.slane %v848_v18, 4 }
 0x20a   : > { %v842_v21 = vrot.slane %v841_v19, 2  ;;  %v850_v22 = vadd.f32 %v849_v20, %v848_v18 }
 0x20c   : > { %v843_v23 = vadd.f32 %v842_v21, %v841_v19  ;;  %v851_v24 = vrot.slane %v850_v22, 2 }
 0x20e   : > { %v844_v25 = vrot.slane %v843_v23, 1  ;;  %v852_v26 = vadd.f32 %v851_v24, %v850_v22 }
 0x210   : > { %v853_v27 = vrot.slane %v852_v26, 1  ;;  %v845_v28 = vadd.f32 %v844_v25, %v843_v23 }
 0x212   : > { %v854_v29 = vadd.f32 %v853_v27, %v852_v26 }
 0x214   : > { %v856_v30 = vsel %vm855_vm4, %v845_v28, %v854_v29 }
 0x215   : > { %857 = vst [vmem:[%s181_s28] sm:$0x3] %v856_v30 }
 0x216 PF: > { %s14_s12 = sadd.s32 1, %s1168_s12  }
 0x217   : > { %p11_p4 = scmp.ge.s32.totalorder %s14_s12, 4  }
 0x219   :  { %13 = sbr.rel (!%p11_p4) target bundleno = 1 (0x1), region = 70 }

// kernel: double_conv.4
= control target key start
LH: loop header
LB: loop body
LE: loop exit
PB: predicated region body
PF: predicated region fallthrough
CT: control target
= control target key end

     0   :  { %s1889_s18 = smov 0   ;;  %s2240_s0 = inlined_call_operand.vmem [shape: bf16[2,16,128], index: 0, kind: input, shape index: {}]   ;;  %s2241_s1 = inlined_call_operand.vmem [shape: f32[1,128], index: 1, kind: input, shape index: {}]   ;;  %s2242_s2 = inlined_call_operand.vmem [shape: f32[1,128], index: 2, kind: input, shape index: {}]   ;;  %s2243_s3 = inlined_call_operand.vmem [shape: bf16[1152,128], index: 3, kind: input, shape index: {}]   ;;  %s2244_s4 = inlined_call_operand.vmem [shape: bf16[2,16,128], index: 4, kind: output, shape index: {0}]   ;;  %s2245_s5 = inlined_call_operand.vmem [shape: f32[2,2,128], index: 5, kind: output, shape index: {1}]  }
   0x1 LB: > { %s1495_s19 = sadd.s32 4294967295, %s1851_s18   ;;  %p1499_p0 = scmp.ge.s32.totalorder %s1851_s18, 1  ;;  %s1851_s18 = sphi %s1889_s18, %s16_s18  }
   0x2   : > { %p190_p1 = scmp.lt.s32.totalorder %s1851_s18, 3 }
   0x4   : > { %p191_p2 = pnand %p1499_p0, %p190_p1 }
   0x5   : > { %p222_p3 = scmp.lt.s32.totalorder (!%p191_p2), %s1495_s19, 1  ;;  %vm262_vm0 = vcmask (!%p191_p2), 1040384   ;;  %vm263_vm1 = vsmask.f32 (!%p191_p2), 256  ;;  %vm265_vm2 = vcmask (!%p191_p2), 126980   ;;  %vm280_vm8 = vcmask (!%p191_p2), 60416  }
   0x6   : > { %194 = sbr.rel (%p191_p2) target bundleno = 580 (0x244), region = 36  ;;  %vm1901_vm3 = vmand (!%p191_p2), %vm262_vm0, %vm263_vm1  ;;  %vm266_vm4 = vsmask.f32 (!%p191_p2), 4352  ;;  %v269_v1 = vld [vmem:[#allocation2] sm:$0x11] (!%p191_p2)  ;;  %vm285_vm9 = vcmask (!%p191_p2), 126016  }
   0x7   : > { %vm272_vm5 = vsmask.f32 (!%p191_p2), 7938  ;;  %v1505_v2 = vld [vmem:[%s2241_s1] ss:$0 sm:$0xff] (!%p191_p2)  ;;  %vm267_vm6 = vmand (!%p191_p2), %vm265_vm2, %vm266_vm4  ;;  %vm274_vm7 = vsmask.f32 (!%p191_p2), 7954 }
   0x8   : > { %vm268_vm10 = vmor (!%p191_p2), %vm267_vm6, %vm1901_vm3  ;;  %v277_v3 = vld [vmem:[#allocation2 + $0x10] sm:$0x11] (!%p191_p2)  ;;  %v1853_v4 = vmov (!%p191_p2), 0   ;;  %v1506_v6 = vld [vmem:[%s2242_s2] ss:$0 sm:$0xff] (!%p191_p2)  ;;  %vm330_vm12 = vcmask (!%p191_p2), 1043520  }
   0x9   : > { %282 = vst.msk [vmem:[#allocation2 + $0x8] sm:$0xf] (!%p191_p2), %vm280_vm8, %v1853_v4  ;;  %v270_v7 = vsel (!%p191_p2), %vm268_vm10, 0, %v269_v1  ;;  %vm273_vm11 = vmand (!%p191_p2), %vm262_vm0, %vm272_vm5  ;;  %vm332_vm14 = vcmask (!%p191_p2), 64516   ;;  %vm283_vm3 = vcmask (!%p191_p2), 57344   ;;  %vm288_vm6 = vcmask (!%p191_p2), 122944  }
   0xa   : > { %287 = vst.msk [vmem:[#allocation2 + $0xc] sm:$0xf] (!%p191_p2), %vm285_vm9, %v1853_v4  ;;  %271 = vst [vmem:[#allocation2] sm:$0x11] (!%p191_p2), %v270_v7  ;;  %s1854_s28 = smov (!%p191_p2), 8   ;;  %v1770_v34 = vld [vmem:[%s2243_s3 + $0x40] sm:$0xff] (!%p191_p2)  }
   0xb   : > { %vm275_vm13 = vmand (!%p191_p2), %vm265_vm2, %vm274_vm7  ;;  %281 = vst.msk [vmem:[#allocation2] sm:$0xf] (!%p191_p2), %vm280_vm8, %v1853_v4  ;;  %v1771_v35 = vld [vmem:[%s2243_s3] sm:$0xff] (!%p191_p2)   ;;  %v1773_v37 = vld [vmem:[%s2243_s3 + $0x48] sm:$0xff] (!%p191_p2)   ;;  %1625 = vmatprep.subr.bf16.mxu0 (!%p191_p2), %v1770_v34  ;;  %s1855_s6 = smov (!%p191_p2), 120   ;;  %s1856_s7 = smov (!%p191_p2), 112  }
   0xc   : > { %vm276_vm15 = vmor (!%p191_p2), %vm275_vm13, %vm273_vm11  ;;  %286 = vst.msk [vmem:[#allocation2 + $0x4] sm:$0xf] (!%p191_p2), %vm285_vm9, %v1853_v4  ;;  %vm344_vm9 = vcmask (!%p191_p2), 61444   ;;  %v1772_v36 = vld [vmem:[%s2243_s3 + $0xc0] sm:$0xff] (!%p191_p2)   ;;  %v1776_v39 = vld [vmem:[%s2243_s3 + $0xc8] sm:$0xff] (!%p191_p2)   ;;  %1626 = vmatpush3.bf16.msra.mxu0 (!%p191_p2), %v1771_v35 }
   0xd   : > { %s2257_s19 = smov (!%p222_p3, %s1495_s19), 1  ;;  %v278_v12 = vsel %vm276_vm15, 0, %v277_v3  ;;  %vm1931_vm10 = vmand %vm330_vm12, %vm272_vm5  ;;  %vm342_vm5 = vcmask 1040448   ;;  %vm295_vm15 = vsmask.f32 4368  ;;  %v1774_v38 = vld [vmem:[%s2243_s3 + $0x80] sm:$0xff]   ;;  %1647 = vmatprep.subr.bf16.mxu1 %v1772_v36  ;;  %1627 = vmatprep.subr.bf16.mxu0 %v1773_v37 }
   0xe   : > { %s1610_s20 = sshll.u32 %s2257_s19, 3  ;;  %279 = vst [vmem:[#allocation2 + $0x10] sm:$0x11] %v278_v12  ;;  %vm1937_vm2 = vmand %vm332_vm14, %vm274_vm7  ;;  %1648 = vmatpush3.bf16.msra.mxu1 %v1774_v38  ;;  %v1775_v40 = vld [vmem:[%s2243_s3 + $0x8] sm:$0xff]   ;;  %v1777_v42 = vld [vmem:[%s2243_s3 + $0x50] sm:$0xff]   ;;  %s1504_s24 = sshll.u32 %s2257_s19, 1 }
   0xf   : > { %s226_s25 = scalar_lea.vmem %s2240_s0, %s1610_s20  ;;  %284 = vst.msk [vmem:[#allocation2 + $0x10] sm:$0x1] %vm283_vm3, %v1853_v4  ;;  %vm334_vm8 = vmor %vm1937_vm2, %vm1931_vm10  ;;  %v1778_v41 = vld [vmem:[%s2243_s3 + $0x88] sm:$0xff]   ;;  %1649 = vmatprep.subr.bf16.mxu1 %v1776_v39  ;;  %v1780_v43 = vld [vmem:[%s2243_s3 + $0xd0] sm:$0xff]   ;;  %vm391_vm10 = vcmask 916480   ;;  %vm1858_vm2 = vmmov 0   ;;  %s231_s23 = scalar_lea.vmem %s2244_s4, %s1610_s20 }
  0x10   : > { %v1617_v5 = vld [vmem:[%s226_s25] sm:$0xff]   ;;  %289 = vst.msk [vmem:[#allocation2 + $0x14] sm:$0x1] %vm288_vm6, %v1853_v4  ;;  %vm1946_vm11 = vmand %vm342_vm5, %vm263_vm1  ;;  %1628 = vmatpush3.bf16.msra.mxu0 %v1775_v40  ;;  %v1779_v44 = vld [vmem:[%s2243_s3 + $0x10] sm:$0xff]   ;;  %vm373_vm6 = vcmask 982016   ;;  %s235_s26 = scalar_lea.vmem %s2245_s5, %s1504_s24 }
  0x11   : > { %v1618_v8 = vunpack.c.l.bf16 %v1617_v5  ;;  %v1619_v9 = vunpack.c.h.bf16 %v1617_v5  ;;  %vm1951_vm7 = vmand %vm344_vm9, %vm266_vm4  ;;  %v1782_v45 = vld [vmem:[%s2243_s3 + $0x90] sm:$0xff]   ;;  %1629 = vmatprep.subr.bf16.mxu0 %v1777_v42  ;;  %v1781_v46 = vld [vmem:[%s2243_s3 + $0x58] sm:$0xff]  }
  0x12   : > { %vm346_vm13 = vmor %vm1951_vm7, %vm1946_vm11  ;;  %1650 = vmatpush3.bf16.msra.mxu1 %v1778_v41  ;;  %v1784_v47 = vld [vmem:[%s2243_s3 + $0xd8] sm:$0xff]   ;;  %v1785_v50 = vld [vmem:[%s2243_s3 + $0x60] sm:$0xff]  }
  0x13   : > { %v248_v10 = vmul.f32 %v1618_v8, %v1505_v2  ;;  %v249_v11 = vmul.f32 %v1619_v9, %v1505_v2  ;;  %vm296_vm4 = vmor %vm263_vm1, %vm295_vm15  ;;  %1651 = vmatprep.subr.bf16.mxu1 %v1780_v43  ;;  %v1783_v48 = vld [vmem:[%s2243_s3 + $0x18] sm:$0xff]   ;;  %v1788_v51 = vld [vmem:[%s2243_s3 + $0xe0] sm:$0xff]   ;;  %vm323_vm1 = vcmask 64512  }
  0x14   : > { %v1786_v49 = vld [vmem:[%s2243_s3 + $0x98] sm:$0xff]   ;;  %1630 = vmatpush3.bf16.msra.mxu0 %v1779_v44  ;;  %v1787_v52 = vld [vmem:[%s2243_s3 + $0x20] sm:$0xff]   ;;  %v1789_v54 = vld [vmem:[%s2243_s3 + $0x68] sm:$0xff]  }
  0x15   : > { %v257_v15 = vadd.f32 %v1506_v6, %v248_v10  ;;  %v258_v16 = vadd.f32 %v1506_v6, %v249_v11  ;;  %1631 = vmatprep.subr.bf16.mxu0 %v1781_v46  ;;  %v1790_v53 = vld [vmem:[%s2243_s3 + $0xa0] sm:$0xff]   ;;  %v1792_v55 = vld [vmem:[%s2243_s3 + $0xe8] sm:$0xff]   ;;  %v1793_v58 = vld [vmem:[%s2243_s3 + $0x70] sm:$0xff]  }
  0x16   : > { %1652 = vmatpush3.bf16.msra.mxu1 %v1782_v45  ;;  %v1791_v56 = vld [vmem:[%s2243_s3 + $0x28] sm:$0xff]   ;;  %v1796_v59 = vld [vmem:[%s2243_s3 + $0xf0] sm:$0xff]   ;;  %v1797_v62 = vld [vmem:[%s2243_s3 + $0x78] sm:$0xff]  }
  0x17   : > { %v259_v17 = vmax.f32 %v257_v15, 0.0  ;;  %v260_v18 = vmax.f32 %v258_v16, 0.0  ;;  %1653 = vmatprep.subr.bf16.mxu1 %v1784_v47  ;;  %v1794_v57 = vld [vmem:[%s2243_s3 + $0xa8] sm:$0xff]   ;;  %v1795_v60 = vld [vmem:[%s2243_s3 + $0x30] sm:$0xff]   ;;  %v1799_v63 = vld [vmem:[%s2243_s3 + $0x38] sm:$0xff]  }
  0x18   : > { %1632 = vmatpush3.bf16.msra.mxu0 %v1783_v48  ;;  %v1798_v61 = vld [vmem:[%s2243_s3 + $0xb0] sm:$0xff]   ;;  %v335_v2 = vld [vmem:[#allocation2] sm:$0xff]  ;;  %v1800_v11 = vld [vmem:[%s2243_s3 + $0xf8] sm:$0xff]  }
  0x19   : > { %v1612_v20 = vpack.c.bf16 %v259_v17, %v259_v17  ;;  %v1613_v21 = vpack.c.bf16 %v260_v18, %v260_v18  ;;  %1633 = vmatprep.subr.bf16.mxu0 %v1785_v50  ;;  %v347_v4 = vld [vmem:[#allocation2 + $0x10] sm:$0x11]  ;;  %vm340_vm3 = vmor %vm332_vm14, %vm330_vm12  ;;  %v1801_v13 = vld [vmem:[%s2243_s3 + $0xb8] sm:$0xff]   ;;  %vm406_vm12 = vsmask.f32 7424  ;;  %vm526_vm14 = vcmask 1046528  }
  0x1a   : > { %1654 = vmatpush3.bf16.msra.mxu1 %v1786_v49  ;;  %v1802_v14 = vld [vmem:[%s2243_s3 + $0x140] sm:$0xff]  }
  0x1b   : > { %v298_v23 = vshrl.u32 %v1612_v20, 16  ;;  %v301_v24 = vshll.u32 %v1612_v20, 16  ;;  %v306_v25 = vshrl.u32 %v1613_v21, 16  ;;  %v309_v26 = vshll.u32 %v1613_v21, 16  ;;  %1655 = vmatprep.subr.bf16.mxu1 %v1788_v51  ;;  %v1805_v16 = vld [vmem:[%s2243_s3 + $0x1c0] sm:$0xff]  }
  0x1c   : > { %1634 = vmatpush3.bf16.msra.mxu0 %v1787_v52 }
  0x1d   : > { %v300_v27 = vrot.slane %v298_v23, 7  ;;  %v308_v28 = vrot.slane %v306_v25, 7  ;;  %1635 = vmatprep.subr.bf16.mxu0 %v1789_v54 }
  0x1e   : > { %1656 = vmatpush3.bf16.msra.mxu1 %v1790_v53 }
  0x1f   : > { %v303_v29 = vor.u32 %v301_v24, %v300_v27  ;;  %v304_v30 = vrot.slane %v300_v27, 4  ;;  %v313_v31 = vrot.slane %v308_v28, 4  ;;  %v311_v32 = vor.u32 %v309_v26, %v308_v28  ;;  %1657 = vmatprep.subr.bf16.mxu1 %v1792_v55 }
  0x20   : > { %1636 = vmatpush3.bf16.msra.mxu0 %v1791_v56 }
  0x21   : > { %314 = vrot.lane.b32.xlu0 %v303_v29, %s1854_s28  ;;  %318 = vrot.lane.b32.xlu1 %v313_v31, %s1854_s28  ;;  %v312_v33 = vsel %vm296_vm4, %v304_v30, %v311_v32 }
  0x22   : > { %1658 = vmatpush3.bf16.msra.mxu1 %v1794_v57  ;;  %1637 = vmatprep.subr.bf16.mxu0 %v1793_v58 }
  0x23   : > { %1659 = vmatprep.subr.bf16.mxu1 %v1796_v59 }
  0x24   : > { %1638 = vmatpush3.bf16.msra.mxu0 %v1795_v60 }
  0x25   : > { %316 = vrot.lane.b32.xlu0 %v312_v33, %s1854_s28  ;;  %1639 = vmatprep.subr.bf16.mxu0 %v1797_v62 }
  0x26   : > { %1660 = vmatpush3.bf16.msra.mxu1 %v1798_v61 }
  0x27   : > { %1661 = vmatprep.subr.bf16.mxu1 %v1800_v11 }
  0x28   : > { %1640 = vmatpush3.bf16.msra.mxu0 %v1799_v63 }
  0x29   : > { %1669 = vmatprep.subr.bf16.mxu0 %v1802_v14 }
  0x2a   : > { %1662 = vmatpush3.bf16.msra.mxu1 %v1801_v13 }
  0x2b   : > { %1691 = vmatprep.subr.bf16.mxu1 %v1805_v16 }
  0x93   : > { %v315_v0 = vpop.permute.xlu0 %314  ;;  %v319_v1 = vpop.permute.xlu1 %318 }
  0x94   : > { %v320_v3 = vrot.slane %v315_v0, 4  ;;  %v322_v5 = vrot.slane %v319_v1, 4 }
  0x96   : > { %v324_v6 = vsel %vm323_vm1, %v320_v3, %v315_v0  ;;  %v326_v7 = vsel %vm323_vm1, %v322_v5, %v319_v1 }
  0x97   : > { %v336_v8 = vsel %vm334_vm8, %v324_v6, %v335_v2  ;;  %v348_v9 = vsel %vm346_vm13, %v326_v7, %v347_v4  ;;  %v317_v10 = vpop.permute.xlu0 %316 }
  0x98   : > { %337 = vst [vmem:[#allocation2] sm:$0xff] %v336_v8  ;;  %349 = vst [vmem:[#allocation2 + $0x10] sm:$0x11] %v348_v9  ;;  %v321_v12 = vrot.slane %v317_v10, 4 }
  0x9a   : > { %v325_v15 = vsel %vm323_vm1, %v321_v12, %v317_v10 }
  0x9b   : > { %341 = vst.msk [vmem:[#allocation2 + $0x8] sm:$0xff] %vm340_vm3, %v325_v15 }
  0x9f   : > { %v470_v17 = vld [vmem:[#allocation2 + $0x10] sm:$0x11]  ;;  %v532_v49 = vld [vmem:[#allocation2] sm:$0xee] }
  0xa0   : > { %v1757_v18 = vld [vmem:[#allocation2 + $0x10] ss:$0 sps:$4 sm:$0x11]   ;;  %v1523_v19 = vcombine.high %v470_v17, %v470_v17  ;;  %v1522_v20 = vcombine.low %v470_v17, %v470_v17  ;;  %v561_v62 = vld [vmem:[#allocation2] sm:$0xee] }
  0xa1   : > { %v423_v21 = vld [vmem:[#allocation2 + $0x10] sm:$0x11]  ;;  %v415_v26 = vshll.u32 %v1757_v18, 16  ;;  %v1804_v17 = vld [vmem:[%s2243_s3 + $0x100] sm:$0xff]  }
  0xa2   : > { %v1519_v22 = vcombine.high %v423_v21, %v423_v21  ;;  %v534_v23 = vld [vmem:[#allocation2 + $0x10] sm:$0x11]  ;;  %v2077_v24 = vld [vmem:[#allocation2 + $0x8] sm:$0xff]  ;;  %v504_v29 = vshll.u32 %v1523_v19, 16  ;;  %v492_v30 = vshll.u32 %v1522_v20, 16  ;;  %v1518_v32 = vcombine.low %v423_v21, %v423_v21  ;;  %v1807_v21 = vld [vmem:[%s2243_s3 + $0x180] sm:$0xff]  }
  0xa3   : > { %v1756_v25 = vld [vmem:[#allocation2] ss:$8 sps:$4 sm:$0xff]   ;;  %v1511_v27 = vcombine.high %v336_v8, %v2077_v24  ;;  %v1510_v28 = vcombine.low %v336_v8, %v2077_v24  ;;  %v1529_v33 = vcombine.high %v534_v23, %v534_v23  ;;  %v1528_v34 = vcombine.low %v534_v23, %v534_v23  ;;  %v563_v59 = vld [vmem:[#allocation2 + $0x10] sm:$0x11] }
  0xa4   : > { %v410_v31 = vshll.u32 %v1756_v25, 16  ;;  %v408_v35 = vshrl.u32 %v1756_v25, 16  ;;  %v417_v36 = vrot.slane %v415_v26, 1  ;;  %v457_v38 = vshll.u32 %v1519_v22, 16  ;;  %v1803_v19 = vld [vmem:[#allocation2] ss:$8 sps:$4 sm:$0xff]  }
  0xa5   : > { %371 = vrot.lane.b32.xlu0 %v1511_v27, %s1855_s6  ;;  %369 = vrot.lane.b32.xlu1 %v1510_v28, %s1855_s6  ;;  %v499_v37 = vshll.u32 %v1511_v27, 16  ;;  %v497_v40 = vshrl.u32 %v1511_v27, 16  ;;  %v506_v41 = vrot.slane %v504_v29, 1  ;;  %v487_v42 = vshll.u32 %v1510_v28, 16  ;;  %v1806_v20 = vld [vmem:[%s2243_s3 + $0x148] sm:$0xff]  }
  0xa6   : > { %v412_v39 = vrot.slane %v410_v31, 1  ;;  %v485_v44 = vshrl.u32 %v1510_v28, 16  ;;  %v494_v45 = vrot.slane %v492_v30, 1  ;;  %v445_v48 = vshll.u32 %v1518_v32, 16  ;;  %v1809_v25 = vld [vmem:[%s2243_s3 + $0x1c8] sm:$0xff]   ;;  %v1812_v31 = vld [vmem:[%s2243_s3 + $0x110] sm:$0xff]  }
  0xa7   : > { %v501_v43 = vrot.slane %v499_v37, 1  ;;  %v489_v47 = vrot.slane %v487_v42, 1  ;;  %v1527_v53 = vcombine.high %v532_v49, %v2077_v24  ;;  %v459_v55 = vrot.slane %v457_v38, 1  ;;  %v1813_v32 = vld [vmem:[%s2243_s3 + $0x1d0] sm:$0xff]   ;;  %v1816_v38 = vld [vmem:[%s2243_s3 + $0x118] sm:$0xff]  }
  0xa8   : > { %v413_v46 = vor.u32 %v412_v39, %v408_v35  ;;  %v1526_v56 = vcombine.low %v532_v49, %v2077_v24  ;;  %v447_v58 = vrot.slane %v445_v48, 1  ;;  %v552_v61 = vrot.slane %v1529_v33, 1  ;;  %v1815_v35 = vld [vmem:[%s2243_s3 + $0x190] sm:$0xff]   ;;  %v1817_v39 = vld [vmem:[%s2243_s3 + $0x1d8] sm:$0xff]   ;;  %v1823_v48 = vld [vmem:[%s2243_s3 + $0x1a0] sm:$0xff]  }
  0xa9   : > { %389 = vrot.lane.b32.xlu0 %v1511_v27, %s1856_s7  ;;  %387 = vrot.lane.b32.xlu1 %v1510_v28, %s1856_s7  ;;  %v502_v50 = vor.u32 %v501_v43, %v497_v40  ;;  %v490_v52 = vor.u32 %v489_v47, %v485_v44  ;;  %v551_v60 = vrot.slane %v1527_v53, 1  ;;  %v549_v1 = vrot.slane %v1528_v34, 1  ;;  %v1810_v27 = vld [vmem:[%s2243_s3 + $0x150] sm:$0xff]   ;;  %v1811_v28 = vld [vmem:[%s2243_s3 + $0x188] sm:$0xff]  }
  0xaa   : > { %v418_v51 = vsel %vm406_vm12, %v413_v46, %v417_v36  ;;  %v548_v0 = vrot.slane %v1526_v56, 1  ;;  %v1531_v2 = vcombine.high %v561_v62, %v2077_v24  ;;  %v1533_v4 = vcombine.high %v563_v59, %v563_v59  ;;  %v1814_v34 = vld [vmem:[%s2243_s3 + $0x158] sm:$0xff]   ;;  %v1818_v40 = vld [vmem:[%s2243_s3 + $0x160] sm:$0xff]   ;;  %v1822_v47 = vld [vmem:[%s2243_s3 + $0x168] sm:$0xff]  }
  0xab   : > { %1248 = vmatprep.mubr.bf16.mxu1 %v418_v51  ;;  %v507_v54 = vsel %vm406_vm12, %v502_v50, %v506_v41  ;;  %v495_v57 = vsel %vm406_vm12, %v490_v52, %v494_v45  ;;  %v460_v63 = vsel %vm406_vm12, %v502_v50, %v459_v55  ;;  %v448_v3 = vsel %vm406_vm12, %v490_v52, %v447_v58  ;;  %v1819_v41 = vld [vmem:[%s2243_s3 + $0x198] sm:$0xff]   ;;  %v1820_v44 = vld [vmem:[%s2243_s3 + $0x120] sm:$0xff]   ;;  %v1824_v49 = vld [vmem:[%s2243_s3 + $0x128] sm:$0xff]  }
  0xac   : > { %v1530_v5 = vcombine.low %v561_v62, %v2077_v24  ;;  %v1532_v6 = vcombine.low %v563_v59, %v563_v59  ;;  %v553_v7 = vsel %vm526_vm14, %v551_v60, %v552_v61  ;;  %v580_v8 = vrot.slane %v1531_v2, 1  ;;  %v1808_v24 = vld [vmem:[%s2243_s3 + $0x108] sm:$0xff]   ;;  %v1821_v45 = vld [vmem:[%s2243_s3 + $0x1e0] sm:$0xff]   ;;  %v1826_v51 = vld [vmem:[%s2243_s3 + $0x170] sm:$0xff]  }
  0xad   : > { %510 = vrot.lane.b32.xlu0 %v507_v54, %s1856_s7  ;;  %508 = vrot.lane.b32.xlu1 %v495_v57, %s1856_s7  ;;  %v550_v9 = vsel %vm526_vm14, %v548_v0, %v549_v1  ;;  %v581_v10 = vrot.slane %v1533_v4, 1  ;;  %v1825_v50 = vld [vmem:[%s2243_s3 + $0x1e8] sm:$0xff]   ;;  %v1828_v53 = vld [vmem:[%s2243_s3 + $0x130] sm:$0xff]  }
  0xae   : > { %v577_v11 = vrot.slane %v1530_v5, 1  ;;  %v578_v12 = vrot.slane %v1532_v6, 1  ;;  %v1827_v52 = vld [vmem:[%s2243_s3 + $0x1a8] sm:$0xff]   ;;  %v1829_v54 = vld [vmem:[%s2243_s3 + $0x1f0] sm:$0xff]   ;;  %v1830_v55 = vld [vmem:[%s2243_s3 + $0x178] sm:$0xff]  }
  0xaf   : > { %v582_v13 = vsel %vm526_vm14, %v580_v8, %v581_v10  ;;  %v1831_v56 = vld [vmem:[%s2243_s3 + $0x1b0] sm:$0xff]   ;;  %v1832_v57 = vld [vmem:[%s2243_s3 + $0x138] sm:$0xff]   ;;  %v1836_v59 = vld [vmem:[#allocation2] ss:$8 sps:$4 sm:$0xfe]  }
  0xb0   : > { %v579_v14 = vsel %vm526_vm14, %v577_v11, %v578_v12  ;;  %v1833_v58 = vld [vmem:[%s2243_s3 + $0x1f8] sm:$0xff]   ;;  %v1837_v60 = vld [vmem:[#allocation2 + $0x10] ss:$0 sps:$4 sm:$0x11]   ;;  %v1835_v62 = vld [vmem:[%s2243_s3 + $0x200] sm:$0xff]   ;;  %v527_v0 = vrot.slane %v1836_v59, 1 }
  0xb1   : > { %463 = vrot.lane.b32.xlu0 %v460_v63, %s1855_s6  ;;  %461 = vrot.lane.b32.xlu1 %v448_v3, %s1855_s6  ;;  %v1834_v61 = vld [vmem:[%s2243_s3 + $0x1b8] sm:$0xff]   ;;  %v1857_v63 = vmov 0.0   ;;  %v528_v1 = vrot.slane %v1837_v60, 1  ;;  %v1838_v3 = vld [vmem:[%s2243_s3 + $0x208] sm:$0xff]  }
  0xb2   : > { %v1839_v5 = vld [vmem:[%s2243_s3 + $0x210] sm:$0xff]   ;;  %v1840_v6 = vld [vmem:[%s2243_s3 + $0x218] sm:$0xff]   ;;  %v1842_v8 = vld [vmem:[%s2243_s3 + $0x228] sm:$0xff]  }
  0xb3   : > { %v529_v4 = vsel %vm526_vm14, %v527_v0, %v528_v1  ;;  %v1844_v10 = vld [vmem:[%s2243_s3 + $0x238] sm:$0xff]  }
  0xb5   : > { %556 = vrot.lane.b32.xlu0 %v553_v7, %s1855_s6  ;;  %554 = vrot.lane.b32.xlu1 %v550_v9, %s1855_s6  ;;  %v1841_v7 = vld [vmem:[%s2243_s3 + $0x220] sm:$0xff]   ;;  %v1843_v9 = vld [vmem:[%s2243_s3 + $0x230] sm:$0xff]  }
  0xb9   : > { %585 = vrot.lane.b32.xlu0 %v582_v13, %s1856_s7  ;;  %583 = vrot.lane.b32.xlu1 %v579_v14, %s1856_s7 }
 0x117   : > { %v372_v15 = vpop.permute.xlu0 %371  ;;  %v370_v16 = vpop.permute.xlu1 %369 }
 0x118   : > { %v374_v18 = vsel %vm373_vm6, %v370_v16, %v372_v15 }
 0x119   : > { %1207 = vmatprep.mubr.bf16.mxu0 %v374_v18 }
 0x11a   : > { %1208 = vmatmul.mubr.bf16.vlgmr.msra.gmra.mrb[0].mxu0 %v1803_v19 }
 0x11b   : > { %1670 = vmatpush3.bf16.msra.mxu0 %v1804_v17  ;;  %v390_v22 = vpop.permute.xlu0 %389  ;;  %v388_v23 = vpop.permute.xlu1 %387 }
 0x11c   : > { %v392_v26 = vsel %vm391_vm10, %v388_v23, %v390_v22  ;;  %1671 = vmatprep.subr.bf16.mxu0 %v1806_v20 }
 0x11d   : > { %1249 = vmatmul.mubr.bf16.vlgmr.msra.gmra.mrb[0].mxu1 %v392_v26 }
 0x11e   : > { %1692 = vmatpush3.bf16.msra.mxu1 %v1807_v21 }
 0x11f   : > { %1672 = vmatpush3.bf16.msra.mxu0 %v1808_v24  ;;  %v511_v29 = vpop.permute.xlu0 %510  ;;  %v509_v30 = vpop.permute.xlu1 %508  ;;  %1693 = vmatprep.subr.bf16.mxu1 %v1809_v25 }
 0x120   : > { %1673 = vmatprep.subr.bf16.mxu0 %v1810_v27  ;;  %v512_v33 = vsel %vm391_vm10, %v509_v30, %v511_v29 }
 0x121   : > { %1289 = vmatprep.mubr.bf16.mxu0 %v512_v33 }
 0x122   : > { %1694 = vmatpush3.bf16.msra.mxu1 %v1811_v28 }
 0x123   : > { %1674 = vmatpush3.bf16.msra.mxu0 %v1812_v31  ;;  %v464_v36 = vpop.permute.xlu0 %463  ;;  %v462_v37 = vpop.permute.xlu1 %461  ;;  %1695 = vmatprep.subr.bf16.mxu1 %v1813_v32 }
 0x124   : > { %1675 = vmatprep.subr.bf16.mxu0 %v1814_v34  ;;  %v465_v2 = vsel %vm373_vm6, %v462_v37, %v464_v36 }
 0x126   : > { %1696 = vmatpush3.bf16.msra.mxu1 %v1815_v35 }
 0x127   : > { %1676 = vmatpush3.bf16.msra.mxu0 %v1816_v38  ;;  %v557_v42 = vpop.permute.xlu0 %556  ;;  %v555_v43 = vpop.permute.xlu1 %554  ;;  %1697 = vmatprep.subr.bf16.mxu1 %v1817_v39 }
 0x128   : > { %1677 = vmatprep.subr.bf16.mxu0 %v1818_v40  ;;  %v558_v46 = vsel %vm373_vm6, %v555_v43, %v557_v42 }
 0x129   : > { %1330 = vmatprep.mubr.bf16.mxu1 %v558_v46 }
 0x12a   : > { %1698 = vmatpush3.bf16.msra.mxu1 %v1819_v41 }
 0x12b   : > { %1678 = vmatpush3.bf16.msra.mxu0 %v1820_v44  ;;  %1699 = vmatprep.subr.bf16.mxu1 %v1821_v45  ;;  %v586_v11 = vpop.permute.xlu0 %585  ;;  %v584_v12 = vpop.permute.xlu1 %583 }
 0x12c   : > { %1679 = vmatprep.subr.bf16.mxu0 %v1822_v47  ;;  %v587_v13 = vsel %vm391_vm10, %v584_v12, %v586_v11 }
 0x12e   : > { %1700 = vmatpush3.bf16.msra.mxu1 %v1823_v48 }
 0x12f   : > { %1680 = vmatpush3.bf16.msra.mxu0 %v1824_v49  ;;  %1701 = vmatprep.subr.bf16.mxu1 %v1825_v50 }
 0x130   : > { %1681 = vmatprep.subr.bf16.mxu0 %v1826_v51 }
 0x132   : > { %1702 = vmatpush3.bf16.msra.mxu1 %v1827_v52 }
 0x133   : > { %1682 = vmatpush3.bf16.msra.mxu0 %v1828_v53  ;;  %1703 = vmatprep.subr.bf16.mxu1 %v1829_v54 }
 0x134   : > { %1683 = vmatprep.subr.bf16.mxu0 %v1830_v55 }
 0x136   : > { %1704 = vmatpush3.bf16.msra.mxu1 %v1831_v56 }
 0x137   : > { %1684 = vmatpush3.bf16.msra.mxu0 %v1832_v57  ;;  %1705 = vmatprep.subr.bf16.mxu1 %v1833_v58 }
 0x138   : > { %1722 = vmatprep.subr.bf16.mxu0 %v1857_v63 }
 0x13a   : > { %1290 = vmatmul.mubr.bf16.vlgmr.msra.gmra.mrb[4].mxu0 %v465_v2  ;;  %1706 = vmatpush3.bf16.msra.mxu1 %v1834_v61 }
 0x13b   : > { %1723 = vmatpush3.bf16.msra.mxu0 %v1835_v62  ;;  %1738 = vmatprep.mubr.msk.bf16.mxu0 %vm1858_vm2, %v1857_v63 }
 0x13c   : > { %1724 = vmatprep.subr.bf16.mxu0 %v1857_v63 }
 0x13d   : > { %1331 = vmatmul.mubr.bf16.vlgmr.msra.gmra.mrb[4].mxu1 %v529_v4 }
 0x13f   : > { %1725 = vmatpush3.bf16.msra.mxu0 %v1838_v3 }
 0x140   : > { %1726 = vmatprep.subr.bf16.mxu0 %v1857_v63 }
 0x143   : > { %1727 = vmatpush3.bf16.msra.mxu0 %v1839_v5 }
 0x144   : > { %1728 = vmatprep.subr.bf16.mxu0 %v1857_v63 }
 0x147   : > { %1729 = vmatpush3.bf16.msra.mxu0 %v1840_v6 }
 0x148   : > { %1730 = vmatprep.subr.bf16.mxu0 %v1857_v63 }
 0x14b   : > { %1731 = vmatpush3.bf16.msra.mxu0 %v1841_v7 }
 0x14c   : > { %1732 = vmatprep.subr.bf16.mxu0 %v1857_v63 }
 0x14f   : > { %1733 = vmatpush3.bf16.msra.mxu0 %v1842_v8 }
 0x150   : > { %1734 = vmatprep.subr.bf16.mxu0 %v1857_v63 }
 0x153   : > { %1735 = vmatpush3.bf16.msra.mxu0 %v1843_v9 }
 0x154   : > { %1736 = vmatprep.subr.bf16.mxu0 %v1857_v63 }
 0x157   : > { %1737 = vmatpush3.bf16.msra.mxu0 %v1844_v10 }
 0x15a   : > { %1739 = vmatmul.mubr.bf16.vlgmr.msra.gmra.mrb[8].mxu0 %v587_v13 }
 0x1ed   : > { %v1641_v14 = vpop.f32.mrb[0].mxu0 }
 0x1ee   : > { %v1642_v15 = vpop.f32.mrb[1].mxu0 }
 0x1ef   : > { %v1643_v16 = vadd.f32 %v1642_v15, %v1641_v14  ;;  %v1644_v17 = vpop.f32.mrb[2].mxu0 }
 0x1f0   : > { %v1645_v18 = vpop.f32.mrb[3].mxu0  ;;  %v1663_v19 = vpop.f32.mrb[0].mxu1 }
 0x1f1   : > { %v1646_v20 = vadd.f32 %v1645_v18, %v1644_v17  ;;  %v1664_v21 = vpop.f32.mrb[1].mxu1 }
 0x1f2   : > { %v1665_v22 = vadd.f32 %v1664_v21, %v1663_v19  ;;  %v1666_v23 = vpop.f32.mrb[2].mxu1 }
 0x1f3   : > { %v1667_v24 = vpop.f32.mrb[3].mxu1 }
 0x1f4   : > { %v1251_v25 = vadd.f32 %v1665_v22, %v1643_v16  ;;  %v1668_v26 = vadd.f32 %v1667_v24, %v1666_v23 }
 0x1f6   : > { %v1254_v27 = vadd.f32 %v1668_v26, %v1646_v20 }
 0x20d   : > { %v1685_v28 = vpop.f32.mrb[4].mxu0 }
 0x20e   : > { %v1686_v29 = vpop.f32.mrb[5].mxu0 }
 0x20f   : > { %v1687_v30 = vadd.f32 %v1686_v29, %v1685_v28  ;;  %v1688_v31 = vpop.f32.mrb[6].mxu0 }
 0x210   : > { %v1689_v32 = vpop.f32.mrb[7].mxu0  ;;  %v1707_v33 = vpop.f32.mrb[4].mxu1 }
 0x211   : > { %v1292_v34 = vadd.f32 %v1687_v30, %v1251_v25  ;;  %v1690_v35 = vadd.f32 %v1689_v32, %v1688_v31  ;;  %v1708_v36 = vpop.f32.mrb[5].mxu1 }
 0x212   : > { %v1709_v37 = vadd.f32 %v1708_v36, %v1707_v33  ;;  %v1710_v38 = vpop.f32.mrb[6].mxu1 }
 0x213   : > { %v1295_v39 = vadd.f32 %v1690_v35, %v1254_v27  ;;  %v1711_v40 = vpop.f32.mrb[7].mxu1 }
 0x214   : > { %v1712_v41 = vadd.f32 %v1711_v40, %v1710_v38  ;;  %v1333_v42 = vadd.f32 %v1709_v37, %v1292_v34 }
 0x216   : > { %v1336_v43 = vadd.f32 %v1712_v41, %v1295_v39 }
 0x22d   : > { %v1373_v44 = vpop.f32.mrb[8].mxu0 }
 0x22e   : > { %v1374_v45 = vadd.f32 %v1373_v44, %v1333_v42  ;;  %v1740_v46 = vpop.f32.mrb[9].mxu0 }
 0x22f   : > { %v1376_v47 = vpop.f32.mrb[10].mxu0 }
 0x230   : > { %v1377_v48 = vadd.f32 %v1376_v47, %v1336_v43  ;;  %v1741_v49 = vpop.f32.mrb[11].mxu0  ;;  %v1387_v50 = vmul.f32 %v1374_v45, %v1374_v45 }
 0x232   : > { %v1380_v51 = vadd.f32 %v1377_v48, %v1374_v45  ;;  %v1388_v52 = vmul.f32 %v1377_v48, %v1377_v48  ;;  %v1623_v53 = vpack.c.bf16 %v1377_v48, %v1374_v45 }
 0x234   : > { %v1381_v54 = vrot.slane %v1380_v51, 4  ;;  %v1389_v55 = vadd.f32 %v1388_v52, %v1387_v50  ;;  %1624 = vst [vmem:[%s231_s23] sm:$0xff] %v1623_v53  }
 0x236   : > { %v1382_v56 = vadd.f32 %v1381_v54, %v1380_v51  ;;  %v1390_v57 = vrot.slane %v1389_v55, 4 }
 0x238   : > { %v1383_v58 = vrot.slane %v1382_v56, 2  ;;  %v1391_v59 = vadd.f32 %v1390_v57, %v1389_v55 }
 0x23a   : > { %v1384_v60 = vadd.f32 %v1383_v58, %v1382_v56  ;;  %v1392_v61 = vrot.slane %v1391_v59, 2 }
 0x23c   : > { %v1385_v62 = vrot.slane %v1384_v60, 1  ;;  %v1393_v63 = vadd.f32 %v1392_v61, %v1391_v59 }
 0x23e   : > { %v1394_v0 = vrot.slane %v1393_v63, 1  ;;  %v1386_v1 = vadd.f32 %v1385_v62, %v1384_v60 }
 0x240   : > { %v1395_v2 = vadd.f32 %v1394_v0, %v1393_v63 }
 0x242   : > { %v1397_v3 = vsel %vm262_vm0, %v1386_v1, %v1395_v2 }
 0x243   : > { %1398 = vst [vmem:[%s235_s26] sm:$0x3] %v1397_v3 }
 0x244 PF: > { %s16_s18 = sadd.s32 1, %s1851_s18  }
 0x245   : > { %p13_p4 = scmp.ge.s32.totalorder %s16_s18, 4  }
 0x247   :  { %15 = sbr.rel (!%p13_p4) target bundleno = 1 (0x1), region = 78 }

// kernel: double_conv.5
= control target key start
LH: loop header
LB: loop body
LE: loop exit
PB: predicated region body
PF: predicated region fallthrough
CT: control target
= control target key end

     0   :  { %s307_s12 = smov 0   ;;  %s324_s0 = inlined_call_operand.vmem [shape: bf16[2,16,128], index: 0, kind: input, shape index: {}]   ;;  %s325_s1 = inlined_call_operand.vmem [shape: f32[1,128], index: 1, kind: input, shape index: {}]   ;;  %s326_s2 = inlined_call_operand.vmem [shape: f32[1,128], index: 2, kind: input, shape index: {}]   ;;  %s327_s3 = inlined_call_operand.vmem [shape: f32[2,16,128], index: 3, kind: output, shape index: {}]  }
   0x1 LB: > { %s252_s13 = sadd.s32 4294967295, %s285_s12   ;;  %p256_p0 = scmp.ge.s32.totalorder %s285_s12, 1  ;;  %s285_s12 = sphi %s307_s12, %s13_s12  }
   0x2   : > { %p137_p1 = scmp.lt.s32.totalorder %s285_s12, 3 }
   0x4   : > { %p138_p2 = pnand %p256_p0, %p137_p1 }
   0x5   : > { %p161_p3 = scmp.lt.s32.totalorder (!%p138_p2), %s252_s13, 1  ;;  %v261_v1 = vld [vmem:[%s325_s1] ss:$0 sm:$0xff] (!%p138_p2) }
   0x6   : > { %141 = sbr.rel (%p138_p2) target bundleno = 26 (0x1a), region = 32  ;;  %v262_v4 = vld [vmem:[%s326_s2] ss:$0 sm:$0xff] (!%p138_p2) }
   0xd   : > { %s329_s13 = smov (!%p161_p3, %s252_s13), 1 }
   0xe   : > { %s265_s14 = sshll.u32 %s329_s13, 3  ;;  %s266_s22 = sshll.u32 %s329_s13, 4 }
   0xf   : > { %s165_s17 = scalar_lea.vmem %s324_s0, %s265_s14  ;;  %s170_s25 = scalar_lea.vmem %s327_s3, %s266_s22 }
  0x10   : > { %v268_v0 = vld [vmem:[%s165_s17] sm:$0xff]  }
  0x11   : > { %v269_v2 = vunpack.c.l.bf16 %v268_v0  ;;  %v270_v3 = vunpack.c.h.bf16 %v268_v0 }
  0x13   : > { %v182_v5 = vmul.f32 %v269_v2, %v261_v1  ;;  %v183_v6 = vmul.f32 %v270_v3, %v261_v1 }
  0x15   : > { %v191_v7 = vadd.f32 %v262_v4, %v182_v5  ;;  %v192_v8 = vadd.f32 %v262_v4, %v183_v6 }
  0x17   : > { %v193_v9 = vmax.f32 %v191_v7, 0.0  ;;  %v194_v10 = vmax.f32 %v192_v8, 0.0 }
  0x19   : > { %195 = vst [vmem:[%s170_s25] sm:$0xff] %v193_v9  ;;  %196 = vst [vmem:[%s170_s25 + $0x8] sm:$0xff] %v194_v10 }
  0x1a PF: > { %s13_s12 = sadd.s32 1, %s285_s12  }
  0x1b   : > { %p10_p4 = scmp.ge.s32.totalorder %s13_s12, 4  }
  0x1d   :  { %12 = sbr.rel (!%p10_p4) target bundleno = 1 (0x1), region = 62 }

</bundles_post_ra>
